<compile_context>
chip_gen: v7x
topology: tpu7x:2x2x1
jax: 0.10.0
libtpu: 0.0.40
codegen_flags: <defaults>
</compile_context>

<pallas_src>
import functools

import jax
import jax.numpy as jnp
from jax.experimental import pallas as pl
from jax.experimental.pallas import tpu as pltpu


def _swiglu_ffn_kernel(x_ref, w12_ref, w3_ref, o_ref, acc_ref):
    """One (token-tile, hidden-chunk) step of the fused FFN.

    x_ref  : (TM, D)    bf16 token tile
    w12_ref: (D, 2*TH)  bf16 [w1^T | w2^T] fused gate-weight chunk
    w3_ref : (TH, D)    bf16 w3^T chunk
    o_ref  : (TM, D)    output tile (written on last hidden step)
    acc_ref: (TM, D)    f32 accumulator scratch
    """
    h_idx = pl.program_id(1)

    @pl.when(h_idx == 0)
    def _():
        acc_ref[...] = jnp.zeros_like(acc_ref)

    th = w3_ref.shape[0]

    # Single fused gate matmul produces both h1 and h2 (bf16 in, f32 accum).
    h12 = jnp.dot(x_ref[...], w12_ref[...], preferred_element_type=jnp.float32)
    h1 = h12[:, :th]
    h2 = h12[:, th:]

    # SwiGLU gate in f32.
    g = (h1 * jax.nn.sigmoid(h1)) * h2

    # Down-projection for this hidden chunk, accumulated in f32.
    acc_ref[...] += jnp.dot(
        g.astype(w3_ref.dtype), w3_ref[...], preferred_element_type=jnp.float32
    )

    @pl.when(h_idx == pl.num_programs(1) - 1)
    def _():
        o_ref[...] = acc_ref[...].astype(o_ref.dtype)


def _round_up(x, m):
    return ((x + m - 1) // m) * m


def _pick_hidden_tile(H):
    for cand in (2048, 1024, 512, 256, 128):
        if H % cand == 0:
            return cand
    return H


@functools.partial(jax.jit, static_argnames=("tm",))
def feed_forward(x, w1, w2, w3, *, tm=256):
    """x: (B, S, dim).  w1,w2: (hidden, dim).  w3: (dim, hidden).

    Returns (B, S, dim); same forward semantics as the PyTorch module
    (matmuls run in bf16 with f32 accumulation).
    """
    B, S, D = x.shape
    H = w1.shape[0]
    M = B * S

    # Token tile: at least 128 MXU rows, but no larger than the padded token
    # count (keeps tiny-shape / decode cases cheap).  Multiple of 8 sublanes.
    tm_eff = min(tm, _round_up(M, 128))
    tm_eff = max(8, _round_up(tm_eff, 8))
    M_pad = _round_up(M, tm_eff)

    th = _pick_hidden_tile(H)
    nh = H // th

    # --- weight layout: fused + hidden-chunked, cast to bf16 ---------------
    # (nh, D, 2*th): chunk h holds [w1^T[:, h*th:(h+1)*th] | w2^T[:, ...]]
    w1c = w1.T.astype(jnp.bfloat16).reshape(D, nh, th).transpose(1, 0, 2)
    w2c = w2.T.astype(jnp.bfloat16).reshape(D, nh, th).transpose(1, 0, 2)
    w12c = jnp.concatenate([w1c, w2c], axis=-1)           # (nh, D, 2*th)
    w3c = w3.T.astype(jnp.bfloat16).reshape(nh, th, D)    # (nh, th, D)

    # --- activations --------------------------------------------------------
    x2d = x.reshape(M, D)
    if M_pad != M:
        x2d = jnp.pad(x2d, ((0, M_pad - M), (0, 0)))
    x2d = x2d.astype(jnp.bfloat16)

    # --- VMEM budget (double-buffered tiles + f32 accumulator) --------------
    vmem_needed = (
        2 * tm_eff * D * 2            # x tiles (bf16)
        + 2 * D * (2 * th) * 2        # fused gate weight tiles (bf16)
        + 2 * th * D * 2              # w3 tiles (bf16)
        + 2 * tm_eff * D * 4          # output tiles (f32)
        + tm_eff * D * 4              # accumulator scratch (f32)
    )
    vmem_limit = int(
        min(max(int(vmem_needed * 1.5), 32 * 1024 * 1024), 120 * 1024 * 1024)
    )

    cost = pl.CostEstimate(
        flops=6 * M * D * H,                      # 2 gate matmuls + down proj
        transcendentals=M * H,                    # sigmoid
        bytes_accessed=M * D * 2 + M * D * 4 + 3 * D * H * 2,
    )

    out2d = pl.pallas_call(
        _swiglu_ffn_kernel,
        out_shape=jax.ShapeDtypeStruct((M_pad, D), x.dtype),
        grid_spec=pltpu.PrefetchScalarGridSpec(
            num_scalar_prefetch=0,
            grid=(M_pad // tm_eff, nh),
            in_specs=[
                pl.BlockSpec((tm_eff, D), lambda i, h: (i, 0)),          # x tile
                pl.BlockSpec((None, D, 2 * th), lambda i, h: (h, 0, 0)),  # [w1|w2]^T chunk
                pl.BlockSpec((None, th, D), lambda i, h: (h, 0, 0)),      # w3^T chunk
            ],
            out_specs=pl.BlockSpec((tm_eff, D), lambda i, h: (i, 0)),
            scratch_shapes=[pltpu.VMEM((tm_eff, D), jnp.float32)],
        ),
        compiler_params=pltpu.CompilerParams(
            dimension_semantics=("parallel", "arbitrary"),
            vmem_limit_bytes=vmem_limit,
        ),
        cost_estimate=cost,
    )(x2d, w12c, w3c)

    return out2d[:M].reshape(B, S, D)


def _hidden_dim(dim, multiple_of=256, ffn_dim_multiplier=None):
    hidden_dim = 4 * dim
    hidden_dim = int(2 * hidden_dim / 3)
    if ffn_dim_multiplier is not None:
        hidden_dim = int(ffn_dim_multiplier * hidden_dim)
    hidden_dim = multiple_of * ((hidden_dim + multiple_of - 1) // multiple_of)
    return hidden_dim


if __name__ == "__main__":
    # Small, TPU-tile-friendly shapes: dim=128 -> hidden = 256*ceil(341/256) = 512
    batch, seq, dim = 2, 8, 128
    hidden = _hidden_dim(dim, multiple_of=256)

    key = jax.random.PRNGKey(0)
    kx, k1, k2, k3 = jax.random.split(key, 4)

    x = jax.random.normal(kx, (batch, seq, dim), dtype=jnp.float32)
    # Deterministic synthetic weights (nn.Linear weight shapes: (out, in)).
    w1 = jax.random.normal(k1, (hidden, dim), dtype=jnp.float32) * (1.0 / dim**0.5)
    w2 = jax.random.normal(k2, (hidden, dim), dtype=jnp.float32) * (1.0 / dim**0.5)
    w3 = jax.random.normal(k3, (dim, hidden), dtype=jnp.float32) * (1.0 / hidden**0.5)

    out = feed_forward(x, w1, w2, w3)
    out = jax.block_until_ready(out)

    # Pure-f32 reference; kernel matmuls run in bf16 -> loosened tolerance.
    h1 = x @ w1.T
    h2 = x @ w2.T
    ref = (jax.nn.silu(h1) * h2) @ w3.T
    assert out.shape == (batch, seq, dim)
    assert jnp.allclose(out, ref, atol=5e-2, rtol=5e-2), "mismatch vs reference"

    print("KERNEL_OK")
</pallas_src>

<mosaic_0001>
module attributes {stable_mosaic.version = 11 : i64} {
  func.func @_swiglu_ffn_kernel(%arg0: i32, %arg1: i32, %arg2: memref<128x128xbf16, #tpu.memory_space<vmem>>, %arg3: memref<1x128x1024xbf16, #tpu.memory_space<vmem>>, %arg4: memref<1x512x128xbf16, #tpu.memory_space<vmem>>, %arg5: memref<128x128xf32, #tpu.memory_space<vmem>>, %arg6: memref<128x128xf32, #tpu.memory_space<vmem>>) attributes {dimension_semantics = [#tpu.dimension_semantics<parallel>, #tpu.dimension_semantics<arbitrary>], iteration_bounds = array<i64: 1, 1>, scalar_prefetch = 0 : i64, scratch_operands = 1 : i64, tpu.core_type = #tpu.core_type<tc>, window_params = [{transform_indices = @transform_0, window_bounds = array<i64: 128, 128>}, {transform_indices = @transform_1, window_bounds = array<i64: 1, 128, 1024>}, {transform_indices = @transform_2, window_bounds = array<i64: 1, 512, 128>}, {transform_indices = @transform_3, window_bounds = array<i64: 128, 128>}]} {
    %c0_i32 = arith.constant 0 : i32
    %0 = arith.cmpi eq, %arg1, %c0_i32 : i32
    %1 = arith.extui %0 : i1 to i32
    %c0_i32_0 = arith.constant 0 : i32
    %2 = arith.cmpi ne, %1, %c0_i32_0 : i32
    scf.if %2 {
      %cst_16 = arith.constant 0.000000e+00 : f32
      %26 = vector.broadcast %cst_16 : f32 to vector<128x128xf32>
      %c0_17 = arith.constant 0 : index
      %c0_18 = arith.constant 0 : index
      %27 = vector.load %arg6[%c0_17, %c0_18] : memref<128x128xf32, #tpu.memory_space<vmem>>, vector<128x128xf32>
      tpu.vector_store %arg6[%c0_17, %c0_18], %26 {strides = array<i32>} : memref<128x128xf32, #tpu.memory_space<vmem>>, vector<128x128xf32>,
    } else {
    }
    %c0 = arith.constant 0 : index
    %c0_1 = arith.constant 0 : index
    %3 = vector.load %arg2[%c0, %c0_1] : memref<128x128xbf16, #tpu.memory_space<vmem>>, vector<128x128xbf16>
    %c0_2 = arith.constant 0 : index
    %c0_3 = arith.constant 0 : index
    %c0_4 = arith.constant 0 : index
    %4 = vector.load %arg3[%c0_2, %c0_3, %c0_4] : memref<1x128x1024xbf16, #tpu.memory_space<vmem>>, vector<1x128x1024xbf16>
    %5 = vector.shape_cast %4 : vector<1x128x1024xbf16> to vector<128x1024xbf16>
    %cst = arith.constant dense<0.000000e+00> : vector<128x1024xf32>
    %6 = tpu.matmul %3, %5, %cst {dimension_numbers = #tpu.dot_dimension_numbers<[1], [0], [0], [1], [0, 0, 1, 1], [], []>} : vector<128x128xbf16>, vector<128x1024xbf16>, vector<128x1024xf32> -> vector<128x1024xf32>
    %7 = vector.extract_strided_slice %6 {offsets = [0, 0], sizes = [128, 512], strides = [1, 1]} : vector<128x1024xf32> to vector<128x512xf32>
    %8 = vector.extract_strided_slice %6 {offsets = [0, 512], sizes = [128, 512], strides = [1, 1]} : vector<128x1024xf32> to vector<128x512xf32>
    %9 = arith.negf %7 : vector<128x512xf32>
    %10 = math.exp %9 : vector<128x512xf32>
    %cst_5 = arith.constant 1.000000e+00 : f32
    %11 = vector.broadcast %cst_5 : f32 to vector<128x512xf32>
    %12 = arith.addf %11, %10 : vector<128x512xf32>
    %13 = arith.divf %11, %12 : vector<128x512xf32>
    %14 = arith.mulf %7, %13 : vector<128x512xf32>
    %15 = arith.mulf %14, %8 : vector<128x512xf32>
    %c0_6 = arith.constant 0 : index
    %c0_7 = arith.constant 0 : index
    %16 = vector.load %arg6[%c0_6, %c0_7] : memref<128x128xf32, #tpu.memory_space<vmem>>, vector<128x128xf32>
    %17 = arith.truncf %15 : vector<128x512xf32> to vector<128x512xbf16>
    %c0_8 = arith.constant 0 : index
    %c0_9 = arith.constant 0 : index
    %c0_10 = arith.constant 0 : index
    %18 = vector.load %arg4[%c0_8, %c0_9, %c0_10] : memref<1x512x128xbf16, #tpu.memory_space<vmem>>, vector<1x512x128xbf16>
    %19 = vector.shape_cast %18 : vector<1x512x128xbf16> to vector<512x128xbf16>
    %cst_11 = arith.constant dense<0.000000e+00> : vector<128x128xf32>
    %20 = tpu.matmul %17, %19, %cst_11 {dimension_numbers = #tpu.dot_dimension_numbers<[1], [0], [0], [1], [0, 0, 1, 1], [], []>} : vector<128x512xbf16>, vector<512x128xbf16>, vector<128x128xf32> -> vector<128x128xf32>
    %21 = arith.addf %16, %20 : vector<128x128xf32>
    %c0_12 = arith.constant 0 : index
    %c0_13 = arith.constant 0 : index
    %22 = vector.load %arg6[%c0_12, %c0_13] : memref<128x128xf32, #tpu.memory_space<vmem>>, vector<128x128xf32>
    tpu.vector_store %arg6[%c0_12, %c0_13], %21 {strides = array<i32>} : memref<128x128xf32, #tpu.memory_space<vmem>>, vector<128x128xf32>,
    %c0_i32_14 = arith.constant 0 : i32
    %23 = arith.cmpi eq, %arg1, %c0_i32_14 : i32
    %24 = arith.extui %23 : i1 to i32
    %c0_i32_15 = arith.constant 0 : i32
    %25 = arith.cmpi ne, %24, %c0_i32_15 : i32
    scf.if %25 {
      %c0_16 = arith.constant 0 : index
      %c0_17 = arith.constant 0 : index
      %26 = vector.load %arg6[%c0_16, %c0_17] : memref<128x128xf32, #tpu.memory_space<vmem>>, vector<128x128xf32>
      %c0_18 = arith.constant 0 : index
      %c0_19 = arith.constant 0 : index
      %27 = vector.load %arg5[%c0_18, %c0_19] : memref<128x128xf32, #tpu.memory_space<vmem>>, vector<128x128xf32>
      tpu.vector_store %arg5[%c0_18, %c0_19], %26 {strides = array<i32>} : memref<128x128xf32, #tpu.memory_space<vmem>>, vector<128x128xf32>,
    } else {
    }
    return
  }
  func.func @transform_0(%arg0: i32, %arg1: i32) -> (i32, i32) {
    %c0_i32 = arith.constant 0 : i32
    %c0_i32_0 = arith.constant 0 : i32
    return %arg0, %c0_i32 : i32, i32
  }
  func.func @transform_1(%arg0: i32, %arg1: i32) -> (i32, i32, i32) {
    %c0_i32 = arith.constant 0 : i32
    %c0_i32_0 = arith.constant 0 : i32
    %c0_i32_1 = arith.constant 0 : i32
    return %arg1, %c0_i32, %c0_i32_0 : i32, i32, i32
  }
  func.func @transform_2(%arg0: i32, %arg1: i32) -> (i32, i32, i32) {
    %c0_i32 = arith.constant 0 : i32
    %c0_i32_0 = arith.constant 0 : i32
    %c0_i32_1 = arith.constant 0 : i32
    return %arg1, %c0_i32, %c0_i32_0 : i32, i32, i32
  }
  func.func @transform_3(%arg0: i32, %arg1: i32) -> (i32, i32) {
    %c0_i32 = arith.constant 0 : i32
    %c0_i32_0 = arith.constant 0 : i32
    return %arg0, %c0_i32 : i32, i32
  }
}

</mosaic_0001>

<bundles_post_ra>
// kernel: feed_forward.1
= control target key start
LH: loop header
LB: loop body
LE: loop exit
PB: predicated region body
PF: predicated region fallthrough
CT: control target
= control target key end

     0   :  { %v2609_v3 = vmov 0   ;;  %s3494_s1 = inlined_call_operand.vmem [shape: bf16[1,128,1024], index: 1, kind: input, shape index: {}]   ;;  %s3495_s0 = inlined_call_operand.vmem [shape: bf16[128,128], index: 0, kind: input, shape index: {}]   ;;  %s3496_s2 = inlined_call_operand.vmem [shape: bf16[1,512,128], index: 2, kind: input, shape index: {}]   ;;  %s3497_s3 = inlined_call_operand.vmem [shape: f32[128,128], index: 3, kind: output, shape index: {}]  }
   0x1   :  { %v51_v0 = vld [vmem:[%s3494_s1] sm:$0xff]  ;;  %v52_v2 = vld [vmem:[%s3494_s1 + $0x8] sm:$0xff]  ;;  %515 = vmatprep.mubr.bf16.mxu0 %v2609_v3  ;;  %628 = vmatprep.mubr.bf16.mxu1 %v2609_v3  ;;  %v53_v63 = vld [vmem:[%s3494_s1 + $0x10] sm:$0xff] }
   0x2   :  { %v55_v1 = vld [vmem:[%s3494_s1 + $0x20] sm:$0xff]  ;;  %v56_v5 = vld [vmem:[%s3494_s1 + $0x28] sm:$0xff] }
   0x3   :  { %v2025_v4 = vcombine.high %v51_v0, %v55_v1  ;;  %v2024_v6 = vcombine.low %v51_v0, %v55_v1  ;;  %v59_v7 = vld [vmem:[%s3494_s1 + $0x40] sm:$0xff]  ;;  %v2027_v9 = vcombine.high %v52_v2, %v56_v5  ;;  %v2026_v10 = vcombine.low %v52_v2, %v56_v5  ;;  %v60_v12 = vld [vmem:[%s3494_s1 + $0x48] sm:$0xff]  ;;  %v57_v0 = vld [vmem:[%s3494_s1 + $0x30] sm:$0xff] }
   0x4   :  { %v63_v8 = vld [vmem:[%s3494_s1 + $0x60] sm:$0xff]  ;;  %v64_v13 = vld [vmem:[%s3494_s1 + $0x68] sm:$0xff]  ;;  %v54_v1 = vld [vmem:[%s3494_s1 + $0x18] sm:$0xff] }
   0x5   :  { %v2033_v11 = vcombine.high %v59_v7, %v63_v8  ;;  %v67_v14 = vld [vmem:[%s3494_s1 + $0x80] sm:$0xff]  ;;  %483 = vmatprep.subr.bf16.mxu0 %v2025_v4  ;;  %v2035_v15 = vcombine.high %v60_v12, %v64_v13  ;;  %v68_v17 = vld [vmem:[%s3494_s1 + $0x88] sm:$0xff]  ;;  %596 = vmatprep.subr.bf16.mxu1 %v2027_v9  ;;  %v2032_v19 = vcombine.low %v59_v7, %v63_v8  ;;  %v58_v2 = vld [vmem:[%s3494_s1 + $0x38] sm:$0xff] }
   0x6   :  { %v71_v16 = vld [vmem:[%s3494_s1 + $0xa0] sm:$0xff]  ;;  %v72_v18 = vld [vmem:[%s3494_s1 + $0xa8] sm:$0xff]  ;;  %484 = vmatpush1.bf16.msra.mxu0 %v2024_v6  ;;  %597 = vmatpush1.bf16.msra.mxu1 %v2026_v10  ;;  %v2034_v20 = vcombine.low %v60_v12, %v64_v13  ;;  %v2029_v6 = vcombine.high %v53_v63, %v57_v0  ;;  %v2031_v7 = vcombine.high %v54_v1, %v58_v2  ;;  %v61_v9 = vld [vmem:[%s3494_s1 + $0x50] sm:$0xff] }
   0x7   :  { %485 = vmatprep.subr.bf16.mxu0 %v2033_v11  ;;  %v2041_v21 = vcombine.high %v67_v14, %v71_v16  ;;  %598 = vmatprep.subr.bf16.mxu1 %v2035_v15  ;;  %v2043_v22 = vcombine.high %v68_v17, %v72_v18  ;;  %v75_v23 = vld [vmem:[%s3494_s1 + $0xc0] sm:$0xff]  ;;  %v76_v25 = vld [vmem:[%s3494_s1 + $0xc8] sm:$0xff]  ;;  %v2040_v27 = vcombine.low %v67_v14, %v71_v16  ;;  %v65_v10 = vld [vmem:[%s3494_s1 + $0x70] sm:$0xff] }
   0x8   :  { %v79_v24 = vld [vmem:[%s3494_s1 + $0xe0] sm:$0xff]  ;;  %v80_v26 = vld [vmem:[%s3494_s1 + $0xe8] sm:$0xff]  ;;  %v2042_v28 = vcombine.low %v68_v17, %v72_v18  ;;  %v2028_v11 = vcombine.low %v53_v63, %v57_v0  ;;  %v62_v12 = vld [vmem:[%s3494_s1 + $0x58] sm:$0xff]  ;;  %v2030_v14 = vcombine.low %v54_v1, %v58_v2  ;;  %v2037_v15 = vcombine.high %v61_v9, %v65_v10 }
   0x9   :  { %v2049_v29 = vcombine.high %v75_v23, %v79_v24  ;;  %v2051_v30 = vcombine.high %v76_v25, %v80_v26  ;;  %v83_v31 = vld [vmem:[%s3494_s1 + $0x100] sm:$0xff]  ;;  %v84_v33 = vld [vmem:[%s3494_s1 + $0x108] sm:$0xff]  ;;  %v2048_v35 = vcombine.low %v75_v23, %v79_v24  ;;  %v2050_v36 = vcombine.low %v76_v25, %v80_v26  ;;  %v66_v13 = vld [vmem:[%s3494_s1 + $0x78] sm:$0xff] }
   0xa   :  { %486 = vmatpush1.bf16.msra.mxu0 %v2032_v19  ;;  %599 = vmatpush1.bf16.msra.mxu1 %v2034_v20  ;;  %v87_v32 = vld [vmem:[%s3494_s1 + $0x120] sm:$0xff]  ;;  %v88_v34 = vld [vmem:[%s3494_s1 + $0x128] sm:$0xff]  ;;  %v69_v16 = vld [vmem:[%s3494_s1 + $0x90] sm:$0xff]  ;;  %v2039_v18 = vcombine.high %v62_v12, %v66_v13 }
   0xb   :  { %487 = vmatprep.subr.bf16.mxu0 %v2041_v21  ;;  %600 = vmatprep.subr.bf16.mxu1 %v2043_v22  ;;  %v2057_v37 = vcombine.high %v83_v31, %v87_v32  ;;  %v2059_v38 = vcombine.high %v84_v33, %v88_v34  ;;  %v91_v39 = vld [vmem:[%s3494_s1 + $0x140] sm:$0xff]  ;;  %v92_v41 = vld [vmem:[%s3494_s1 + $0x148] sm:$0xff]  ;;  %v2056_v43 = vcombine.low %v83_v31, %v87_v32  ;;  %v73_v17 = vld [vmem:[%s3494_s1 + $0xb0] sm:$0xff] }
   0xc   :  { %v95_v40 = vld [vmem:[%s3494_s1 + $0x160] sm:$0xff]  ;;  %v96_v42 = vld [vmem:[%s3494_s1 + $0x168] sm:$0xff]  ;;  %v2058_v44 = vcombine.low %v84_v33, %v88_v34  ;;  %v70_v19 = vld [vmem:[%s3494_s1 + $0x98] sm:$0xff]  ;;  %v2036_v21 = vcombine.low %v61_v9, %v65_v10  ;;  %v2038_v22 = vcombine.low %v62_v12, %v66_v13  ;;  %v2045_v23 = vcombine.high %v69_v16, %v73_v17 }
   0xd   :  { %v2065_v45 = vcombine.high %v91_v39, %v95_v40  ;;  %v2067_v46 = vcombine.high %v92_v41, %v96_v42  ;;  %v99_v47 = vld [vmem:[%s3494_s1 + $0x180] sm:$0xff]  ;;  %v100_v49 = vld [vmem:[%s3494_s1 + $0x188] sm:$0xff]  ;;  %v2064_v51 = vcombine.low %v91_v39, %v95_v40  ;;  %v2066_v52 = vcombine.low %v92_v41, %v96_v42  ;;  %v74_v20 = vld [vmem:[%s3494_s1 + $0xb8] sm:$0xff] }
   0xe   :  { %488 = vmatpush1.bf16.msra.mxu0 %v2040_v27  ;;  %601 = vmatpush1.bf16.msra.mxu1 %v2042_v28  ;;  %v103_v48 = vld [vmem:[%s3494_s1 + $0x1a0] sm:$0xff]  ;;  %v104_v50 = vld [vmem:[%s3494_s1 + $0x1a8] sm:$0xff]  ;;  %v2047_v24 = vcombine.high %v70_v19, %v74_v20  ;;  %v77_v26 = vld [vmem:[%s3494_s1 + $0xd0] sm:$0xff]  ;;  %v2046_v31 = vcombine.low %v70_v19, %v74_v20 }
   0xf   :  { %489 = vmatprep.subr.bf16.mxu0 %v2049_v29  ;;  %602 = vmatprep.subr.bf16.mxu1 %v2051_v30  ;;  %v2073_v53 = vcombine.high %v99_v47, %v103_v48  ;;  %v107_v54 = vld [vmem:[%s3494_s1 + $0x1c0] sm:$0xff]  ;;  %v2075_v55 = vcombine.high %v100_v49, %v104_v50  ;;  %v108_v57 = vld [vmem:[%s3494_s1 + $0x1c8] sm:$0xff]  ;;  %v2072_v59 = vcombine.low %v99_v47, %v103_v48  ;;  %v81_v27 = vld [vmem:[%s3494_s1 + $0xf0] sm:$0xff] }
  0x10   :  { %v111_v56 = vld [vmem:[%s3494_s1 + $0x1e0] sm:$0xff]  ;;  %v112_v58 = vld [vmem:[%s3494_s1 + $0x1e8] sm:$0xff]  ;;  %v2074_v60 = vcombine.low %v100_v49, %v104_v50  ;;  %v78_v28 = vld [vmem:[%s3494_s1 + $0xd8] sm:$0xff]  ;;  %v2044_v30 = vcombine.low %v69_v16, %v73_v17  ;;  %v2053_v32 = vcombine.high %v77_v26, %v81_v27 }
  0x11   :  { %v2081_v61 = vcombine.high %v107_v54, %v111_v56  ;;  %v2083_v62 = vcombine.high %v108_v57, %v112_v58  ;;  %v2080_v4 = vcombine.low %v107_v54, %v111_v56  ;;  %v2082_v5 = vcombine.low %v108_v57, %v112_v58  ;;  %v2743_v8 = vld [vmem:[%s3495_s0] sm:$0xff]   ;;  %v2776_v25 = vld [vmem:[%s3495_s0 + $0x8] sm:$0xff]   ;;  %v82_v29 = vld [vmem:[%s3494_s1 + $0xf8] sm:$0xff] }
  0x12   :  { %490 = vmatpush1.bf16.msra.mxu0 %v2048_v35  ;;  %603 = vmatpush1.bf16.msra.mxu1 %v2050_v36  ;;  %v2055_v33 = vcombine.high %v78_v28, %v82_v29  ;;  %v85_v34 = vld [vmem:[%s3494_s1 + $0x110] sm:$0xff]  ;;  %v86_v36 = vld [vmem:[%s3494_s1 + $0x118] sm:$0xff]  ;;  %v2054_v39 = vcombine.low %v78_v28, %v82_v29  ;;  %v2318_v9 = vld [vmem:[%s3495_s0 + $0x28] sm:$0xff]  }
  0x13   :  { %491 = vmatprep.subr.bf16.mxu0 %v2057_v37  ;;  %604 = vmatprep.subr.bf16.mxu1 %v2059_v38  ;;  %v89_v35 = vld [vmem:[%s3494_s1 + $0x130] sm:$0xff]  ;;  %v90_v37 = vld [vmem:[%s3494_s1 + $0x138] sm:$0xff]  ;;  %v2052_v38 = vcombine.low %v77_v26, %v81_v27  ;;  %v2322_v12 = vld [vmem:[%s3496_s2 + $0xc0] sm:$0xff]  }
  0x14   :  { %v2061_v40 = vcombine.high %v85_v34, %v89_v35  ;;  %v2809_v41 = vld [vmem:[%s3495_s0 + $0x10] sm:$0xff]   ;;  %v2063_v42 = vcombine.high %v86_v36, %v90_v37  ;;  %v2060_v47 = vcombine.low %v85_v34, %v89_v35  ;;  %v2062_v48 = vcombine.low %v86_v36, %v90_v37  ;;  %v106_v54 = vld [vmem:[%s3494_s1 + $0x1b8] sm:$0xff]  ;;  %v2323_v13 = vld [vmem:[%s3496_s2] sm:$0xff]  }
  0x15   :  { %v2316_v58 = vld [vmem:[%s3495_s0 + $0x18] sm:$0xff]   ;;  %v2319_v10 = vld [vmem:[%s3495_s0 + $0x30] sm:$0xff]   ;;  %v2327_v16 = vld [vmem:[%s3496_s2 + $0x8] sm:$0xff]  }
  0x16   :  { %492 = vmatpush1.bf16.msra.mxu0 %v2056_v43  ;;  %605 = vmatpush1.bf16.msra.mxu1 %v2058_v44  ;;  %v93_v43 = vld [vmem:[%s3494_s1 + $0x150] sm:$0xff]  ;;  %v114_v63 = vld [vmem:[%s3494_s1 + $0x1f8] sm:$0xff]  ;;  %v2328_v17 = vld [vmem:[%s3496_s2 + $0x88] sm:$0xff]  }
  0x17   :  { %493 = vmatprep.subr.bf16.mxu0 %v2065_v45  ;;  %606 = vmatprep.subr.bf16.mxu1 %v2067_v46  ;;  %v97_v44 = vld [vmem:[%s3494_s1 + $0x170] sm:$0xff]  ;;  %v94_v45 = vld [vmem:[%s3494_s1 + $0x158] sm:$0xff]  ;;  %v2337_v26 = vld [vmem:[%s3496_s2 + $0x60] sm:$0xff]  }
  0x18   :  { %v98_v46 = vld [vmem:[%s3494_s1 + $0x178] sm:$0xff]  ;;  %v2069_v49 = vcombine.high %v93_v43, %v97_v44  ;;  %v2330_v19 = vld [vmem:[%s3496_s2 + $0xd0] sm:$0xff]   ;;  %v2338_v27 = vld [vmem:[%s3496_s2 + $0xe0] sm:$0xff]  }
  0x19   :  { %v2071_v50 = vcombine.high %v94_v45, %v98_v46  ;;  %v2070_v56 = vcombine.low %v94_v45, %v98_v46  ;;  %v2331_v20 = vld [vmem:[%s3496_s2 + $0x10] sm:$0xff]   ;;  %v2339_v28 = vld [vmem:[%s3496_s2 + $0x20] sm:$0xff]  }
  0x1a   :  { %494 = vmatpush1.bf16.msra.mxu0 %v2064_v51  ;;  %607 = vmatpush1.bf16.msra.mxu1 %v2066_v52  ;;  %v101_v51 = vld [vmem:[%s3494_s1 + $0x190] sm:$0xff]  ;;  %v2340_v29 = vld [vmem:[%s3496_s2 + $0xa0] sm:$0xff]  }
  0x1b   :  { %495 = vmatprep.subr.bf16.mxu0 %v2073_v53  ;;  %608 = vmatprep.subr.bf16.mxu1 %v2075_v55  ;;  %v105_v52 = vld [vmem:[%s3494_s1 + $0x1b0] sm:$0xff]  ;;  %v102_v53 = vld [vmem:[%s3494_s1 + $0x198] sm:$0xff]  ;;  %v2068_v55 = vcombine.low %v93_v43, %v97_v44 }
  0x1c   :  { %v2077_v57 = vcombine.high %v101_v51, %v105_v52  ;;  %v2076_v0 = vcombine.low %v101_v51, %v105_v52  ;;  %v2078_v1 = vcombine.low %v102_v53, %v106_v54  ;;  %v2345_v34 = vld [vmem:[%s3496_s2 + $0x70] sm:$0xff]  }
  0x1d   :  { %v2346_v35 = vld [vmem:[%s3496_s2 + $0xf0] sm:$0xff]  }
  0x1e   :  { %496 = vmatpush1.bf16.msra.mxu0 %v2072_v59  ;;  %609 = vmatpush1.bf16.msra.mxu1 %v2074_v60  ;;  %v2079_v59 = vcombine.high %v102_v53, %v106_v54  ;;  %v109_v60 = vld [vmem:[%s3494_s1 + $0x1d0] sm:$0xff] }
  0x1f   :  { %497 = vmatprep.subr.bf16.mxu0 %v2081_v61  ;;  %610 = vmatprep.subr.bf16.mxu1 %v2083_v62  ;;  %v113_v61 = vld [vmem:[%s3494_s1 + $0x1f0] sm:$0xff]  ;;  %v110_v62 = vld [vmem:[%s3494_s1 + $0x1d8] sm:$0xff] }
  0x20   :  { %v2085_v2 = vcombine.high %v109_v60, %v113_v61  ;;  %v2347_v36 = vld [vmem:[%s3496_s2 + $0x30] sm:$0xff]  }
  0x21   :  { %v2348_v37 = vld [vmem:[%s3496_s2 + $0xb0] sm:$0xff]  }
  0x22   :  { %498 = vmatpush1.bf16.msra.mxu0 %v2080_v4  ;;  %611 = vmatpush1.bf16.msra.mxu1 %v2082_v5  ;;  %v2087_v4 = vcombine.high %v110_v62, %v114_v63  ;;  %v2084_v5 = vcombine.low %v109_v60, %v113_v61 }
  0x23   :  { %709 = vmatprep.subr.bf16.mxu0 %v2029_v6  ;;  %822 = vmatprep.subr.bf16.mxu1 %v2031_v7  ;;  %v2086_v6 = vcombine.low %v110_v62, %v114_v63  ;;  %v2317_v7 = vld [vmem:[%s3495_s0 + $0x20] sm:$0xff]  }
  0x25   :  { %516 = vmatmul.mubr.bf16.vlgmr.msra.gmra.mrb[0].mxu0 %v2743_v8  ;;  %629 = vmatmul.mubr.bf16.vlgmr.msra.gmra.mrb[0].mxu1 %v2743_v8 }
  0x26   :  { %710 = vmatpush1.bf16.msra.mxu0 %v2028_v11  ;;  %823 = vmatpush1.bf16.msra.mxu1 %v2030_v14  ;;  %v2320_v11 = vld [vmem:[%s3495_s0 + $0x38] sm:$0xff]   ;;  %v2325_v14 = vld [vmem:[%s3496_s2 + $0x48] sm:$0xff]  }
  0x27   :  { %525 = vmatprep.mubr.bf16.mxu0 %v2609_v3  ;;  %638 = vmatprep.mubr.bf16.mxu1 %v2609_v3 }
  0x28   :  { %711 = vmatprep.subr.bf16.mxu0 %v2037_v15  ;;  %824 = vmatprep.subr.bf16.mxu1 %v2039_v18  ;;  %v2326_v15 = vld [vmem:[%s3496_s2 + $0xc8] sm:$0xff]   ;;  %v2329_v18 = vld [vmem:[%s3496_s2 + $0x50] sm:$0xff]  }
  0x2a   :  { %712 = vmatpush1.bf16.msra.mxu0 %v2036_v21  ;;  %825 = vmatpush1.bf16.msra.mxu1 %v2038_v22  ;;  %v2332_v21 = vld [vmem:[%s3496_s2 + $0x90] sm:$0xff]   ;;  %v2333_v22 = vld [vmem:[%s3496_s2 + $0x58] sm:$0xff]  }
  0x2b   :  { %713 = vmatprep.subr.bf16.mxu0 %v2045_v23  ;;  %826 = vmatprep.subr.bf16.mxu1 %v2047_v24  ;;  %v2334_v23 = vld [vmem:[%s3496_s2 + $0xd8] sm:$0xff]  }
  0x2c   :  { %v2335_v24 = vld [vmem:[%s3496_s2 + $0x18] sm:$0xff]  }
  0x2d   :  { %526 = vmatmul.mubr.bf16.gmra.mrb[4].mxu0 %v2776_v25  ;;  %639 = vmatmul.mubr.bf16.gmra.mrb[4].mxu1 %v2776_v25 }
  0x2e   :  { %535 = vmatprep.mubr.bf16.mxu0 %v2609_v3  ;;  %648 = vmatprep.mubr.bf16.mxu1 %v2609_v3 }
  0x2f   :  { %714 = vmatpush1.bf16.msra.mxu0 %v2044_v30  ;;  %827 = vmatpush1.bf16.msra.mxu1 %v2046_v31  ;;  %v2341_v30 = vld [vmem:[%s3496_s2 + $0x68] sm:$0xff]  }
  0x30   :  { %715 = vmatprep.subr.bf16.mxu0 %v2053_v32  ;;  %828 = vmatprep.subr.bf16.mxu1 %v2055_v33  ;;  %v2342_v31 = vld [vmem:[%s3496_s2 + $0xe8] sm:$0xff]  }
  0x31   :  { %v2343_v32 = vld [vmem:[%s3496_s2 + $0x28] sm:$0xff]  }
  0x32   :  { %v2344_v33 = vld [vmem:[%s3496_s2 + $0xa8] sm:$0xff]  }
  0x33   :  { %716 = vmatpush1.bf16.msra.mxu0 %v2052_v38  ;;  %829 = vmatpush1.bf16.msra.mxu1 %v2054_v39  ;;  %v2349_v38 = vld [vmem:[%s3496_s2 + $0x78] sm:$0xff]  }
  0x34   :  { %717 = vmatprep.subr.bf16.mxu0 %v2061_v40  ;;  %830 = vmatprep.subr.bf16.mxu1 %v2063_v42  ;;  %v2350_v39 = vld [vmem:[%s3496_s2 + $0xf8] sm:$0xff]  }
  0x35   :  { %536 = vmatmul.mubr.bf16.gmra.mrb[8].mxu0 %v2809_v41  ;;  %649 = vmatmul.mubr.bf16.gmra.mrb[8].mxu1 %v2809_v41  ;;  %v2351_v40 = vld [vmem:[%s3496_s2 + $0x38] sm:$0xff]  }
  0x36   :  { %545 = vmatprep.mubr.bf16.mxu0 %v2609_v3  ;;  %658 = vmatprep.mubr.bf16.mxu1 %v2609_v3 }
  0x37   :  { %718 = vmatpush1.bf16.msra.mxu0 %v2060_v47  ;;  %831 = vmatpush1.bf16.msra.mxu1 %v2062_v48 }
  0x38   :  { %719 = vmatprep.subr.bf16.mxu0 %v2069_v49  ;;  %832 = vmatprep.subr.bf16.mxu1 %v2071_v50 }
  0x3b   :  { %720 = vmatpush1.bf16.msra.mxu0 %v2068_v55  ;;  %833 = vmatpush1.bf16.msra.mxu1 %v2070_v56 }
  0x3c   :  { %721 = vmatprep.subr.bf16.mxu0 %v2077_v57  ;;  %834 = vmatprep.subr.bf16.mxu1 %v2079_v59 }
  0x3d   :  { %546 = vmatmul.mubr.bf16.gmra.mrb[12].mxu0 %v2316_v58  ;;  %659 = vmatmul.mubr.bf16.gmra.mrb[12].mxu1 %v2316_v58 }
  0x3e   :  { %555 = vmatprep.mubr.bf16.mxu0 %v2609_v3  ;;  %668 = vmatprep.mubr.bf16.mxu1 %v2609_v3 }
  0x3f   :  { %722 = vmatpush1.bf16.msra.mxu0 %v2076_v0  ;;  %835 = vmatpush1.bf16.msra.mxu1 %v2078_v1 }
  0x40   :  { %723 = vmatprep.subr.bf16.mxu0 %v2085_v2  ;;  %836 = vmatprep.subr.bf16.mxu1 %v2087_v4 }
  0x43   :  { %724 = vmatpush1.bf16.msra.mxu0 %v2084_v5  ;;  %837 = vmatpush1.bf16.msra.mxu1 %v2086_v6 }
  0x44   :  { %2248 = vmatprep.subr.bf16.mxu1 %v2322_v12 }
  0x45   :  { %556 = vmatmul.mubr.bf16.gmra.mrb[16].mxu0 %v2317_v7  ;;  %669 = vmatmul.mubr.bf16.gmra.mrb[16].mxu1 %v2317_v7 }
  0x46   :  { %565 = vmatprep.mubr.bf16.mxu0 %v2609_v3  ;;  %678 = vmatprep.mubr.bf16.mxu1 %v2609_v3 }
  0x4d   :  { %566 = vmatmul.mubr.bf16.gmra.mrb[20].mxu0 %v2318_v9  ;;  %679 = vmatmul.mubr.bf16.gmra.mrb[20].mxu1 %v2318_v9 }
  0x4e   :  { %575 = vmatprep.mubr.bf16.mxu0 %v2609_v3  ;;  %688 = vmatprep.mubr.bf16.mxu1 %v2609_v3 }
  0x55   :  { %576 = vmatmul.mubr.bf16.gmra.mrb[24].mxu0 %v2319_v10  ;;  %689 = vmatmul.mubr.bf16.gmra.mrb[24].mxu1 %v2319_v10 }
  0x56   :  { %585 = vmatprep.mubr.bf16.mxu0 %v2609_v3  ;;  %698 = vmatprep.mubr.bf16.mxu1 %v2609_v3 }
  0x5d   :  { %586 = vmatmul.mubr.bf16.gmra.mrb[28].mxu0 %v2320_v11  ;;  %699 = vmatmul.mubr.bf16.gmra.mrb[28].mxu1 %v2320_v11 }
  0x5e   :  { %741 = vmatprep.mubr.bf16.mxu0 %v2609_v3  ;;  %854 = vmatprep.mubr.bf16.mxu1 %v2609_v3 }
  0x65   :  { %742 = vmatmul.mubr.bf16.vlgmr.msra.gmra.mrb[32].mxu0 %v2743_v8  ;;  %855 = vmatmul.mubr.bf16.vlgmr.msra.gmra.mrb[32].mxu1 %v2743_v8  ;;  %v2321_v8 = vld [vmem:[%s3496_s2 + $0x40] sm:$0xff]  }
  0x66   :  { %751 = vmatprep.mubr.bf16.mxu0 %v2609_v3  ;;  %864 = vmatprep.mubr.bf16.mxu1 %v2609_v3 }
  0x67   :  { %2184 = vmatprep.subr.bf16.mxu0 %v2321_v8 }
  0x68   :  { %2185 = vmatpush3.bf16.msra.mxu0 %v2323_v13 }
  0x69   :  { %2186 = vmatprep.subr.bf16.mxu0 %v2325_v14 }
  0x6c   :  { %2187 = vmatpush3.bf16.msra.mxu0 %v2327_v16 }
  0x6d   :  { %752 = vmatmul.mubr.bf16.gmra.mrb[36].mxu0 %v2776_v25  ;;  %865 = vmatmul.mubr.bf16.gmra.mrb[36].mxu1 %v2776_v25  ;;  %v2336_v25 = vld [vmem:[%s3496_s2 + $0x98] sm:$0xff]  }
  0x6e   :  { %761 = vmatprep.mubr.bf16.mxu0 %v2609_v3  ;;  %874 = vmatprep.mubr.bf16.mxu1 %v2609_v3 }
  0x6f   :  { %2188 = vmatprep.subr.bf16.mxu0 %v2329_v18 }
  0x70   :  { %2189 = vmatpush3.bf16.msra.mxu0 %v2331_v20 }
  0x71   :  { %2190 = vmatprep.subr.bf16.mxu0 %v2333_v22 }
  0x74   :  { %2191 = vmatpush3.bf16.msra.mxu0 %v2335_v24 }
  0x75   :  { %762 = vmatmul.mubr.bf16.gmra.mrb[40].mxu0 %v2809_v41  ;;  %875 = vmatmul.mubr.bf16.gmra.mrb[40].mxu1 %v2809_v41  ;;  %v2352_v41 = vld [vmem:[%s3496_s2 + $0xb8] sm:$0xff]  }
  0x76   :  { %771 = vmatprep.mubr.bf16.mxu0 %v2609_v3  ;;  %884 = vmatprep.mubr.bf16.mxu1 %v2609_v3 }
  0x77   :  { %2192 = vmatprep.subr.bf16.mxu0 %v2337_v26 }
  0x78   :  { %2193 = vmatpush3.bf16.msra.mxu0 %v2339_v28 }
  0x79   :  { %2194 = vmatprep.subr.bf16.mxu0 %v2341_v30 }
  0x7c   :  { %2195 = vmatpush3.bf16.msra.mxu0 %v2343_v32 }
  0x7d   :  { %772 = vmatmul.mubr.bf16.gmra.mrb[44].mxu0 %v2316_v58  ;;  %885 = vmatmul.mubr.bf16.gmra.mrb[44].mxu1 %v2316_v58 }
  0x7e   :  { %781 = vmatprep.mubr.bf16.mxu0 %v2609_v3  ;;  %894 = vmatprep.mubr.bf16.mxu1 %v2609_v3 }
  0x7f   :  { %2196 = vmatprep.subr.bf16.mxu0 %v2345_v34 }
  0x80   :  { %2197 = vmatpush3.bf16.msra.mxu0 %v2347_v36 }
  0x81   :  { %2198 = vmatprep.subr.bf16.mxu0 %v2349_v38 }
  0x84   :  { %2199 = vmatpush3.bf16.msra.mxu0 %v2351_v40 }
  0x85   :  { %782 = vmatmul.mubr.bf16.gmra.mrb[48].mxu0 %v2317_v7  ;;  %895 = vmatmul.mubr.bf16.gmra.mrb[48].mxu1 %v2317_v7 }
  0x86   :  { %791 = vmatprep.mubr.bf16.mxu0 %v2609_v3  ;;  %904 = vmatprep.mubr.bf16.mxu1 %v2609_v3 }
  0x8d   :  { %792 = vmatmul.mubr.bf16.gmra.mrb[52].mxu0 %v2318_v9  ;;  %905 = vmatmul.mubr.bf16.gmra.mrb[52].mxu1 %v2318_v9 }
  0x8e   :  { %801 = vmatprep.mubr.bf16.mxu0 %v2609_v3  ;;  %914 = vmatprep.mubr.bf16.mxu1 %v2609_v3 }
  0x95   :  { %802 = vmatmul.mubr.bf16.gmra.mrb[56].mxu0 %v2319_v10  ;;  %915 = vmatmul.mubr.bf16.gmra.mrb[56].mxu1 %v2319_v10 }
  0x96   :  { %811 = vmatprep.mubr.bf16.mxu0 %v2609_v3  ;;  %924 = vmatprep.mubr.bf16.mxu1 %v2609_v3  ;;  %v2324_v3 = vld [vmem:[%s3496_s2 + $0x80] sm:$0xff]  }
  0x97   :  { %2249 = vmatpush3.bf16.msra.mxu1 %v2324_v3 }
  0x98   :  { %2250 = vmatprep.subr.bf16.mxu1 %v2326_v15 }
  0x9b   :  { %2251 = vmatpush3.bf16.msra.mxu1 %v2328_v17 }
  0x9c   :  { %2252 = vmatprep.subr.bf16.mxu1 %v2330_v19 }
  0x9d   :  { %812 = vmatmul.mubr.bf16.gmra.mrb[60].mxu0 %v2320_v11  ;;  %925 = vmatmul.mubr.bf16.gmra.mrb[60].mxu1 %v2320_v11 }
  0x9f   :  { %2253 = vmatpush3.bf16.msra.mxu1 %v2332_v21 }
  0xa0   :  { %2254 = vmatprep.subr.bf16.mxu1 %v2334_v23 }
  0xa3   :  { %2255 = vmatpush3.bf16.msra.mxu1 %v2336_v25 }
  0xa4   :  { %2256 = vmatprep.subr.bf16.mxu1 %v2338_v27 }
  0xa7   :  { %2257 = vmatpush3.bf16.msra.mxu1 %v2340_v29 }
  0xa8   :  { %2258 = vmatprep.subr.bf16.mxu1 %v2342_v31 }
  0xab   :  { %2259 = vmatpush3.bf16.msra.mxu1 %v2344_v33 }
  0xac   :  { %2260 = vmatprep.subr.bf16.mxu1 %v2346_v35 }
  0xaf   :  { %2261 = vmatpush3.bf16.msra.mxu1 %v2348_v37 }
  0xb0   :  { %2262 = vmatprep.subr.bf16.mxu1 %v2350_v39 }
  0xb3   :  { %2263 = vmatpush3.bf16.msra.mxu1 %v2352_v41 }
  0xf8   :  { %v2992_v42 = vpop.f32.mrb[0].mxu0  ;;  %v2995_v44 = vpop.f32.mrb[0].mxu1 }
  0xf9   :  { %v2088_v43 = vmul.f32 -1.442695, %v2992_v42  ;;  %v2997_v45 = vpop.f32.mrb[1].mxu0  ;;  %v2090_v46 = vmul.f32 -1.442695, %v2995_v44  ;;  %v3001_v48 = vpop.f32.mrb[1].mxu1 }
  0xfa   :  { %v2089_v47 = vmul.f32 -1.442695, %v2997_v45  ;;  %v3003_v49 = vpop.f32.mrb[2].mxu0  ;;  %v2091_v50 = vmul.f32 -1.442695, %v3001_v48  ;;  %v3007_v52 = vpop.f32.mrb[2].mxu1 }
  0xfb   :  { %2353 = vpow2.f32 %v2088_v43  ;;  %v2092_v51 = vmul.f32 -1.442695, %v3003_v49  ;;  %v3009_v53 = vpop.f32.mrb[3].mxu0  ;;  %v2094_v54 = vmul.f32 -1.442695, %v3007_v52  ;;  %v3012_v55 = vpop.f32.mrb[3].mxu1 }
  0xfc   :  { %2355 = vpow2.f32 %v2090_v46  ;;  %v2093_v56 = vmul.f32 -1.442695, %v3009_v53  ;;  %v2095_v57 = vmul.f32 -1.442695, %v3012_v55 }
  0xfd   :  { %2357 = vpow2.f32 %v2089_v47 }
  0xfe   :  { %2359 = vpow2.f32 %v2091_v50 }
  0xff   :  { %2361 = vpow2.f32 %v2092_v51 }
 0x100   :  { %2363 = vpow2.f32 %v2094_v54  ;;  %v3016_v58 = vpop.f32.mrb[4].mxu0  ;;  %v3019_v60 = vpop.f32.mrb[4].mxu1 }
 0x101   :  { %2365 = vpow2.f32 %v2093_v56  ;;  %v2096_v59 = vmul.f32 -1.442695, %v3016_v58  ;;  %v3021_v61 = vpop.f32.mrb[5].mxu0  ;;  %v2098_v62 = vmul.f32 -1.442695, %v3019_v60  ;;  %v3025_v0 = vpop.f32.mrb[5].mxu1 }
 0x102   :  { %2367 = vpow2.f32 %v2095_v57  ;;  %v2097_v63 = vmul.f32 -1.442695, %v3021_v61  ;;  %v3027_v1 = vpop.f32.mrb[6].mxu0  ;;  %v2099_v2 = vmul.f32 -1.442695, %v3025_v0  ;;  %v3031_v5 = vpop.f32.mrb[6].mxu1 }
 0x103   :  { %2369 = vpow2.f32 %v2096_v59  ;;  %v2100_v4 = vmul.f32 -1.442695, %v3027_v1  ;;  %3540 = vst [vmem:[#allocation3_spill] sm:$0xff] %v3031_v5  ;;  %v3033_v6 = vpop.f32.mrb[7].mxu0  ;;  %v3035_v7 = vpop.f32.mrb[7].mxu1 }
 0x104   :  { %3541 = vst [vmem:[#allocation4_spill] sm:$0xff] %v3033_v6  ;;  %2371 = vpow2.f32 %v2098_v62  ;;  %3542 = vst [vmem:[#allocation5_spill] sm:$0xff] %v3035_v7  ;;  %v2102_v41 = vmul.f32 -1.442695, %v3031_v5  ;;  %v2101_v51 = vmul.f32 -1.442695, %v3033_v6 }
 0x105   :  { %v2354_v9 = vpop.eup %2353  ;;  %2373 = vpow2.f32 %v2097_v63  ;;  %v2103_v57 = vmul.f32 -1.442695, %v3035_v7 }
 0x106   :  { %v2356_v10 = vpop.eup %2355  ;;  %v1127_v11 = vadd.f32 1.0, %v2354_v9  ;;  %2375 = vpow2.f32 %v2099_v2 }
 0x107   :  { %v2358_v8 = vpop.eup %2357  ;;  %v1129_v12 = vadd.f32 1.0, %v2356_v10  ;;  %2377 = vpow2.f32 %v2100_v4 }
 0x108   :  { %v2360_v13 = vpop.eup %2359  ;;  %2379 = vrcp.f32 %v1127_v11  ;;  %v1128_v3 = vadd.f32 1.0, %v2358_v8  ;;  %v3037_v14 = vpop.f32.mrb[8].mxu0 }
 0x109   :  { %3543 = vst [vmem:[#allocation6_spill] sm:$0xff] %v3037_v14  ;;  %v2362_v15 = vpop.eup %2361  ;;  %2381 = vrcp.f32 %v1129_v12  ;;  %v1130_v16 = vadd.f32 1.0, %v2360_v13  ;;  %v3039_v17 = vpop.f32.mrb[8].mxu1  ;;  %v2104_v2 = vmul.f32 -1.442695, %v3037_v14 }
 0x10a   :  { %3544 = vst [vmem:[#allocation7_spill] sm:$0xff] %v3039_v17  ;;  %v3041_v18 = vpop.f32.mrb[9].mxu0  ;;  %v2364_v19 = vpop.eup %2363  ;;  %2383 = vrcp.f32 %v1128_v3  ;;  %v1131_v20 = vadd.f32 1.0, %v2362_v15  ;;  %v2106_v11 = vmul.f32 -1.442695, %v3039_v17 }
 0x10b   :  { %3545 = vst [vmem:[#allocation8_spill] sm:$0xff] %v3041_v18  ;;  %v3043_v21 = vpop.f32.mrb[9].mxu1  ;;  %v2366_v22 = vpop.eup %2365  ;;  %2385 = vrcp.f32 %v1130_v16  ;;  %v1133_v23 = vadd.f32 1.0, %v2364_v19  ;;  %v2105_v12 = vmul.f32 -1.442695, %v3041_v18 }
 0x10c   :  { %3546 = vst [vmem:[#allocation9_spill] sm:$0xff] %v3043_v21  ;;  %v3045_v24 = vpop.f32.mrb[10].mxu0  ;;  %v3047_v25 = vpop.f32.mrb[10].mxu1  ;;  %2387 = vrcp.f32 %v1131_v20  ;;  %v1132_v27 = vadd.f32 1.0, %v2366_v22  ;;  %v2107_v3 = vmul.f32 -1.442695, %v3043_v21 }
 0x10d   :  { %3547 = vst [vmem:[#allocation10_spill] sm:$0xff] %v3045_v24  ;;  %3548 = vst [vmem:[#allocation11_spill] sm:$0xff] %v3047_v25  ;;  %v2368_v26 = vpop.eup %2367  ;;  %v3049_v28 = vpop.f32.mrb[11].mxu0  ;;  %2389 = vrcp.f32 %v1133_v23  ;;  %v2108_v16 = vmul.f32 -1.442695, %v3045_v24 }
 0x10e   :  { %3549 = vst [vmem:[#allocation12_spill] sm:$0xff] %v3049_v28  ;;  %v2370_v29 = vpop.eup %2369  ;;  %v1134_v30 = vadd.f32 1.0, %v2368_v26  ;;  %v3051_v31 = vpop.f32.mrb[11].mxu1  ;;  %2391 = vrcp.f32 %v1132_v27  ;;  %v2110_v22 = vmul.f32 -1.442695, %v3047_v25 }
 0x10f   :  { %3550 = vst [vmem:[#allocation13_spill] sm:$0xff] %v3051_v31  ;;  %v2372_v32 = vpop.eup %2371  ;;  %v1135_v33 = vadd.f32 1.0, %v2370_v29  ;;  %v2109_v29 = vmul.f32 -1.442695, %v3049_v28 }
 0x110   :  { %v2374_v34 = vpop.eup %2373  ;;  %2393 = vrcp.f32 %v1134_v30  ;;  %v1137_v35 = vadd.f32 1.0, %v2372_v32  ;;  %v3053_v38 = vpop.f32.mrb[12].mxu0 }
 0x111   :  { %v2376_v36 = vpop.eup %2375  ;;  %2395 = vrcp.f32 %v1135_v33  ;;  %v1136_v37 = vadd.f32 1.0, %v2374_v34  ;;  %3551 = vst [vmem:[#allocation14_spill] sm:$0xff] %v3053_v38  ;;  %v3056_v43 = vpop.f32.mrb[12].mxu1  ;;  %v2111_v34 = vmul.f32 -1.442695, %v3051_v31 }
 0x112   :  { %v2378_v39 = vpop.eup %2377  ;;  %2397 = vrcp.f32 %v1137_v35  ;;  %v1138_v40 = vadd.f32 1.0, %v2376_v36  ;;  %3552 = vst [vmem:[#allocation15_spill] sm:$0xff] %v3056_v43  ;;  %v3058_v46 = vpop.f32.mrb[13].mxu0 }
 0x113   :  { %v3060_v47 = vpop.eup %2379  ;;  %2399 = vrcp.f32 %v1136_v37  ;;  %v1139_v50 = vadd.f32 1.0, %v2378_v39  ;;  %v3063_v54 = vpop.f32.mrb[13].mxu1  ;;  %v2112_v39 = vmul.f32 -1.442695, %v3053_v38 }
 0x114   :  { %v3065_v56 = vpop.eup %2381  ;;  %2401 = vrcp.f32 %v1138_v40  ;;  %v3068_v59 = vpop.f32.mrb[14].mxu0 }
 0x115   :  { %v3070_v62 = vpop.f32.mrb[14].mxu1  ;;  %v3072_v63 = vpop.eup %2383  ;;  %2403 = vrcp.f32 %v1139_v50  ;;  %v2114_v50 = vmul.f32 -1.442695, %v3056_v43 }
 0x116   :  { %v3075_v4 = vpop.f32.mrb[15].mxu0  ;;  %v3077_v9 = vpop.f32.mrb[15].mxu1  ;;  %2405 = vpow2.f32 %v2102_v41 }
 0x117   :  { %v3079_v10 = vpop.eup %2385  ;;  %2407 = vpow2.f32 %v2101_v51 }
 0x118   :  { %v3082_v8 = vpop.eup %2387  ;;  %2409 = vpow2.f32 %v2103_v57  ;;  %v3091_v19 = vpop.f32.mrb[16].mxu0 }
 0x119   :  { %v3085_v13 = vpop.eup %2389  ;;  %2411 = vpow2.f32 %v2104_v2  ;;  %v3096_v23 = vpop.f32.mrb[16].mxu1 }
 0x11a   :  { %v3088_v15 = vpop.eup %2391  ;;  %2413 = vpow2.f32 %v2106_v11  ;;  %v3098_v26 = vpop.f32.mrb[17].mxu0 }
 0x11b   :  { %v3093_v20 = vpop.eup %2393  ;;  %3553 = vst [vmem:[#allocation16_spill] sm:$0xff] %v3098_v26  ;;  %2415 = vpow2.f32 %v2105_v12  ;;  %v3103_v30 = vpop.f32.mrb[17].mxu1 }
 0x11c   :  { %v3100_v27 = vpop.eup %2395  ;;  %3554 = vst [vmem:[#allocation17_spill] sm:$0xff] %v3103_v30  ;;  %v3105_v32 = vpop.f32.mrb[18].mxu0  ;;  %2417 = vpow2.f32 %v2107_v3 }
 0x11d   :  { %3555 = vst [vmem:[#allocation18_spill] sm:$0xff] %v3105_v32  ;;  %v3107_v33 = vpop.eup %2397  ;;  %v3110_v35 = vpop.f32.mrb[18].mxu1  ;;  %2419 = vpow2.f32 %v2108_v16 }
 0x11e   :  { %3556 = vst [vmem:[#allocation19_spill] sm:$0xff] %v3110_v35  ;;  %v3112_v36 = vpop.f32.mrb[19].mxu0  ;;  %v3114_v37 = vpop.eup %2399  ;;  %2421 = vpow2.f32 %v2110_v22 }
 0x11f   :  { %3557 = vst [vmem:[#allocation20_spill] sm:$0xff] %v3112_v36  ;;  %v3117_v40 = vpop.f32.mrb[19].mxu1  ;;  %v3119_v41 = vpop.eup %2401  ;;  %2423 = vpow2.f32 %v2109_v29 }
 0x120   :  { %3558 = vst [vmem:[#allocation21_spill] sm:$0xff] %v3117_v40  ;;  %v3122_v51 = vpop.eup %2403  ;;  %2425 = vpow2.f32 %v2111_v34  ;;  %v3124_v12 = vpop.f32.mrb[20].mxu0 }
 0x121   :  { %v2406_v57 = vpop.eup %2405  ;;  %2427 = vpow2.f32 %v2112_v39  ;;  %3559 = vst [vmem:[#allocation22_spill] sm:$0xff] %v3124_v12  ;;  %v3126_v38 = vpop.f32.mrb[20].mxu1 }
 0x122   :  { %v2408_v2 = vpop.eup %2407  ;;  %v1141_v11 = vadd.f32 1.0, %v2406_v57  ;;  %2429 = vpow2.f32 %v2114_v50  ;;  %3560 = vst [vmem:[#allocation23_spill] sm:$0xff] %v3126_v38  ;;  %v3128_v31 = vpop.f32.mrb[21].mxu0 }
 0x123   :  { %v2410_v3 = vpop.eup %2409  ;;  %v1140_v16 = vadd.f32 1.0, %v2408_v2  ;;  %3561 = vst [vmem:[#allocation24_spill] sm:$0xff] %v3128_v31  ;;  %v3130_v28 = vpop.f32.mrb[21].mxu1 }
 0x124   :  { %v2412_v22 = vpop.eup %2411  ;;  %2431 = vrcp.f32 %v1141_v11  ;;  %v1142_v43 = vadd.f32 1.0, %v2410_v3  ;;  %3562 = vst [vmem:[#allocation25_spill] sm:$0xff] %v3130_v28  ;;  %v3132_v25 = vpop.f32.mrb[22].mxu0 }
 0x125   :  { %v2414_v29 = vpop.eup %2413  ;;  %2433 = vrcp.f32 %v1140_v16  ;;  %v1143_v34 = vadd.f32 1.0, %v2412_v22  ;;  %3563 = vst [vmem:[#allocation26_spill] sm:$0xff] %v3132_v25  ;;  %v3134_v39 = vpop.f32.mrb[22].mxu1 }
 0x126   :  { %3564 = vst [vmem:[#allocation27_spill] sm:$0xff] %v3134_v39  ;;  %v2416_v57 = vpop.eup %2415  ;;  %2435 = vrcp.f32 %v1142_v43  ;;  %v1145_v2 = vadd.f32 1.0, %v2414_v29  ;;  %v3136_v50 = vpop.f32.mrb[23].mxu0 }
 0x127   :  { %3565 = vst [vmem:[#allocation28_spill] sm:$0xff] %v3136_v50  ;;  %v2418_v24 = vpop.eup %2417  ;;  %2437 = vrcp.f32 %v1143_v34  ;;  %v1144_v21 = vadd.f32 1.0, %v2416_v57  ;;  %v3138_v18 = vpop.f32.mrb[23].mxu1 }
 0x128   :  { %3566 = vst [vmem:[#allocation29_spill] sm:$0xff] %v3138_v18  ;;  %v2420_v11 = vpop.eup %2419  ;;  %2439 = vrcp.f32 %v1145_v2  ;;  %v1146_v3 = vadd.f32 1.0, %v2418_v24  ;;  %v3140_v7 = vpop.f32.mrb[24].mxu0 }
 0x129   :  { %v2422_v17 = vpop.eup %2421  ;;  %2441 = vrcp.f32 %v1144_v21  ;;  %v1147_v16 = vadd.f32 1.0, %v2420_v11  ;;  %3567 = vst [vmem:[#allocation30_spill] sm:$0xff] %v3140_v7  ;;  %v3142_v6 = vpop.f32.mrb[24].mxu1  ;;  %v2113_v11 = vmul.f32 -1.442695, %v3058_v46 }
 0x12a   :  { %v2424_v22 = vpop.eup %2423  ;;  %2443 = vrcp.f32 %v1146_v3  ;;  %v1149_v14 = vadd.f32 1.0, %v2422_v17  ;;  %3568 = vst [vmem:[#allocation31_spill] sm:$0xff] %v3142_v6  ;;  %v3144_v34 = vpop.f32.mrb[25].mxu0 }
 0x12b   :  { %v2426_v43 = vpop.eup %2425  ;;  %2445 = vrcp.f32 %v1147_v16  ;;  %v1148_v29 = vadd.f32 1.0, %v2424_v22  ;;  %3569 = vst [vmem:[#allocation32_spill] sm:$0xff] %v3144_v34  ;;  %v3146_v2 = vpop.f32.mrb[25].mxu1  ;;  %v2115_v34 = vmul.f32 -1.442695, %v3063_v54 }
 0x12c   :  { %v2428_v57 = vpop.eup %2427  ;;  %2447 = vrcp.f32 %v1149_v14  ;;  %v1150_v5 = vadd.f32 1.0, %v2426_v43  ;;  %v3149_v17 = vpop.f32.mrb[26].mxu0  ;;  %v2116_v43 = vmul.f32 -1.442695, %v3068_v59 }
 0x12d   :  { %v2430_v24 = vpop.eup %2429  ;;  %2449 = vrcp.f32 %v1148_v29  ;;  %v1151_v21 = vadd.f32 1.0, %v2428_v57  ;;  %3570 = vst [vmem:[#allocation33_spill] sm:$0xff] %v3149_v17  ;;  %v3151_v3 = vpop.f32.mrb[26].mxu1 }
 0x12e   :  { %3571 = vst [vmem:[#allocation34_spill] sm:$0xff] %v3151_v3  ;;  %v3153_v16 = vpop.eup %2431  ;;  %2451 = vrcp.f32 %v1150_v5  ;;  %v1153_v22 = vadd.f32 1.0, %v2430_v24  ;;  %v3156_v6 = vpop.f32.mrb[27].mxu0  ;;  %v2118_v3 = vmul.f32 -1.442695, %v3070_v62  ;;  %v1319_v5 = vmul.f32 %v3060_v47, %v2992_v42 }
 0x12f   :  { %3572 = vst [vmem:[#allocation35_spill] sm:$0xff] %v3156_v6  ;;  %v3158_v14 = vpop.eup %2433  ;;  %2453 = vrcp.f32 %v1151_v21  ;;  %v3161_v29 = vpop.f32.mrb[27].mxu1  ;;  %v3172_v24 = vmul.f32 %v3065_v56, %v2995_v44  ;;  %v2117_v21 = vmul.f32 -1.442695, %v3075_v4  ;;  %v2119_v42 = vmul.f32 -1.442695, %v3077_v9 }
 0x130   :  { %3573 = vst [vmem:[#allocation36_spill] sm:$0xff] %v3161_v29  ;;  %v3163_v57 = vpop.eup %2435  ;;  %2455 = vrcp.f32 %v1153_v22  ;;  %v3179_v29 = vmul.f32 %v3072_v63, %v2997_v45  ;;  %v3183_v22 = vmul.f32 %v3079_v10, %v3001_v48  ;;  %v3186_v47 = vpop.f32.mrb[28].mxu0  ;;  %v3192_v56 = vmul.f32 %v3082_v8, %v3003_v49 }
 0x131   :  { %v3166_v17 = vpop.eup %2437  ;;  %2457 = vpow2.f32 %v2113_v11  ;;  %3574 = vst [vmem:[#allocation37_spill] sm:$0xff] %v3186_v47  ;;  %v3196_v11 = vmul.f32 %v3085_v13, %v3007_v52  ;;  %v2120_v45 = vmul.f32 -1.442695, %v3091_v19  ;;  %v3199_v48 = vpop.f32.mrb[28].mxu1  ;;  %v3211_v49 = vmul.f32 %v3093_v20, %v3012_v55 }
 0x132   :  { %v3175_v6 = vpop.eup %2439  ;;  %2459 = vpow2.f32 %v2115_v34  ;;  %3575 = vst [vmem:[#allocation38_spill] sm:$0xff] %v3199_v48  ;;  %v3201_v63 = vpop.f32.mrb[29].mxu0  ;;  %v3207_v34 = vmul.f32 %v3088_v15, %v3009_v53  ;;  %v2122_v52 = vmul.f32 -1.442695, %v3096_v23  ;;  %v2121_v53 = vmul.f32 -1.442695, %v3098_v26 }
 0x133   :  { %v3188_v44 = vpop.eup %2441  ;;  %2461 = vpow2.f32 %v2116_v43  ;;  %3576 = vst [vmem:[#allocation39_spill] sm:$0xff] %v3201_v63  ;;  %v3214_v8 = vpop.f32.mrb[29].mxu1  ;;  %v3222_v63 = vmul.f32 %v3100_v27, %v3016_v58  ;;  %v2123_v15 = vmul.f32 -1.442695, %v3103_v30  ;;  %v2126_v58 = vmul.f32 -1.442695, %v3110_v35 }
 0x134   :  { %v3203_v10 = vpop.eup %2443  ;;  %2463 = vpow2.f32 %v2118_v3  ;;  %3577 = vst [vmem:[#allocation40_spill] sm:$0xff] %v3214_v8  ;;  %v3216_v13 = vpop.f32.mrb[30].mxu0  ;;  %v2124_v8 = vmul.f32 -1.442695, %v3105_v32  ;;  %v3248_v48 = vmul.f32 -1.442695, %v3117_v40 }
 0x135   :  { %3578 = vst [vmem:[#allocation41_spill] sm:$0xff] %v3216_v13  ;;  %v3218_v43 = vpop.eup %2445  ;;  %2465 = vpow2.f32 %v2117_v21  ;;  %v3226_v55 = vpop.f32.mrb[30].mxu1  ;;  %v3234_v13 = vmul.f32 %v3107_v33, %v3019_v60  ;;  %v3254_v33 = vmul.f32 %v3119_v41, %v3025_v0  ;;  %v3271_v47 = vmul.f32 -1.442695, %v3132_v25 }
 0x136   :  { %3579 = vst [vmem:[#allocation42_spill] sm:$0xff] %v3226_v55  ;;  %v3228_v20 = vpop.f32.mrb[31].mxu0  ;;  %v3230_v3 = vpop.eup %2447  ;;  %2467 = vpow2.f32 %v2119_v42  ;;  %v3244_v55 = vmul.f32 %v3114_v37, %v3021_v61  ;;  %v3257_v42 = vmul.f32 -1.442695, %v3124_v12  ;;  %v3265_v37 = vmul.f32 -1.442695, %v3128_v31 }
 0x137   :  { %3580 = vst [vmem:[#allocation43_spill] sm:$0xff] %v3228_v20  ;;  %v3238_v27 = vpop.f32.mrb[31].mxu1  ;;  %v3240_v21 = vpop.eup %2449  ;;  %2469 = vpow2.f32 %v2120_v45  ;;  %v2125_v20 = vmul.f32 -1.442695, %v3112_v36  ;;  %v3268_v45 = vmul.f32 -1.442695, %v3130_v28  ;;  %v3277_v41 = vmul.f32 %v3122_v51, %v3027_v1 }
 0x138   :  { %3581 = vst [vmem:[#allocation44_spill] sm:$0xff] %v3238_v27  ;;  %v3250_v60 = vpop.eup %2451  ;;  %2471 = vpow2.f32 %v2122_v52  ;;  %v3260_v27 = vmul.f32 -1.442695, %v3126_v38  ;;  %v3280_v52 = vmul.f32 -1.442695, %v3134_v39  ;;  %v743_v31 = vpop.f32.mrb[32].mxu0 }
 0x139   :  { %v3262_v61 = vpop.eup %2453  ;;  %2473 = vpow2.f32 %v2121_v53  ;;  %v3283_v53 = vmul.f32 -1.442695, %v3136_v50  ;;  %v3286_v28 = vmul.f32 -1.442695, %v3138_v18  ;;  %v3289_v25 = vmul.f32 -1.442695, %v3140_v7 }
 0x13a   :  { %v3273_v0 = vpop.eup %2455  ;;  %2475 = vpow2.f32 %v2123_v15  ;;  %v1383_v12 = vmul.f32 %v1319_v5, %v743_v31  ;;  %v856_v40 = vpop.f32.mrb[32].mxu1 }
 0x13b   :  { %v2458_v38 = vpop.eup %2457  ;;  %2477 = vpow2.f32 %v2124_v8  ;;  %3582 = vst [vmem:[#allocation45_spill] sm:$0xff] %v3289_v25  ;;  %v745_v1 = vpop.f32.mrb[33].mxu0  ;;  %v1385_v39 = vmul.f32 %v3172_v24, %v856_v40 }
 0x13c   :  { %v2460_v51 = vpop.eup %2459  ;;  %v1152_v15 = vadd.f32 1.0, %v2458_v38  ;;  %2479 = vpow2.f32 %v2126_v58  ;;  %v1384_v50 = vmul.f32 %v3179_v29, %v745_v1  ;;  %v858_v36 = vpop.f32.mrb[33].mxu1 }
 0x13d   :  { %v747_v35 = vpop.f32.mrb[34].mxu0  ;;  %v2462_v32 = vpop.eup %2461  ;;  %v1154_v8 = vadd.f32 1.0, %v2460_v51  ;;  %2481 = vpow2.f32 %v2125_v20  ;;  %v1386_v18 = vmul.f32 %v3183_v22, %v858_v36 }
 0x13e   :  { %v1387_v7 = vmul.f32 %v3192_v56, %v747_v35  ;;  %v860_v30 = vpop.f32.mrb[34].mxu1  ;;  %v749_v31 = vpop.f32.mrb[35].mxu0  ;;  %2483 = vrcp.f32 %v1152_v15  ;;  %v1155_v26 = vadd.f32 1.0, %v2462_v32  ;;  %v3583_v32 = vld [vmem:[#allocation31_spill] sm:$0xff] }
 0x13f   :  { %v2464_v5 = vpop.eup %2463  ;;  %v1389_v38 = vmul.f32 %v3196_v11, %v860_v30  ;;  %v1388_v40 = vmul.f32 %v3207_v34, %v749_v31  ;;  %v862_v24 = vpop.f32.mrb[35].mxu1  ;;  %2485 = vrcp.f32 %v1154_v8  ;;  %v3299_v25 = vmul.f32 -1.442695, %v3583_v32  ;;  %v3584_v34 = vld [vmem:[#allocation3_spill] sm:$0xff]  ;;  %v3585_v31 = vld [vmem:[#allocation4_spill] sm:$0xff] }
 0x140   :  { %v2466_v29 = vpop.eup %2465  ;;  %v1157_v58 = vadd.f32 1.0, %v2464_v5  ;;  %v1463_v1 = vpack.c.bf16 %v1387_v7, %v1383_v12  ;;  %v1390_v20 = vmul.f32 %v3211_v49, %v862_v24  ;;  %2487 = vrcp.f32 %v1155_v26  ;;  %v753_v26 = vpop.f32.mrb[36].mxu0 }
 0x141   :  { %v2468_v51 = vpop.eup %2467  ;;  %v1156_v36 = vadd.f32 1.0, %v2466_v29  ;;  %v1465_v35 = vpack.c.bf16 %v1389_v38, %v1385_v39  ;;  %v1464_v22 = vpack.c.bf16 %v1388_v40, %v1384_v50  ;;  %v1333_v8 = vmul.f32 %v3153_v16, %v3584_v34  ;;  %v3586_v50 = vld [vmem:[#allocation5_spill] sm:$0xff]  ;;  %v755_v40 = vpop.f32.mrb[37].mxu0 }
 0x142   :  { %v2470_v56 = vpop.eup %2469  ;;  %2489 = vrcp.f32 %v1157_v58  ;;  %v1158_v15 = vadd.f32 1.0, %v2468_v51  ;;  %v1466_v30 = vpack.c.bf16 %v1390_v20, %v1386_v18  ;;  %v1332_v7 = vmul.f32 %v3158_v14, %v3585_v31  ;;  %v866_v18 = vpop.f32.mrb[36].mxu1 }
 0x143   :  { %v2472_v11 = vpop.eup %2471  ;;  %2491 = vrcp.f32 %v1156_v36  ;;  %v1159_v12 = vadd.f32 1.0, %v2470_v56  ;;  %1783 = vmatprep.mubr.bf16.mxu0 %v1464_v22  ;;  %v1334_v49 = vmul.f32 %v3163_v57, %v3586_v50  ;;  %v1391_v38 = vmul.f32 %v3222_v63, %v753_v26  ;;  %v868_v58 = vpop.f32.mrb[37].mxu1 }
 0x144   :  { %v2474_v39 = vpop.eup %2473  ;;  %2493 = vrcp.f32 %v1158_v15  ;;  %v1161_v5 = vadd.f32 1.0, %v2472_v11  ;;  %1880 = vmatprep.mubr.bf16.mxu1 %v1466_v30  ;;  %1784 = vmatmul.mubr.bf16.vlgmr.msra.gmra.mrb[64].mxu0 %v1463_v1  ;;  %v1393_v14 = vmul.f32 %v3234_v13, %v866_v18  ;;  %v1392_v29 = vmul.f32 %v3244_v55, %v755_v40  ;;  %v757_v20 = vpop.f32.mrb[38].mxu0  ;;  %v3588_v18 = vld [vmem:[#allocation32_spill] sm:$0xff] }
 0x145   :  { %v2476_v16 = vpop.eup %2475  ;;  %2495 = vrcp.f32 %v1159_v12  ;;  %v1160_v24 = vadd.f32 1.0, %v2474_v39  ;;  %1881 = vmatmul.mubr.bf16.vlgmr.msra.gmra.mrb[64].mxu1 %v1465_v35  ;;  %v1394_v36 = vmul.f32 %v3254_v33, %v868_v58  ;;  %v1395_v63 = vmul.f32 %v3277_v41, %v757_v20  ;;  %v870_v22 = vpop.f32.mrb[38].mxu1  ;;  %v3587_v41 = vld [vmem:[#allocation6_spill] sm:$0xff]  ;;  %v3591_v58 = vld [vmem:[#allocation9_spill] sm:$0xff] }
 0x146   :  { %v2478_v51 = vpop.eup %2477  ;;  %2497 = vrcp.f32 %v1161_v5  ;;  %v1162_v57 = vadd.f32 1.0, %v2476_v16  ;;  %v759_v56 = vpop.f32.mrb[39].mxu0  ;;  %v1397_v30 = vmul.f32 %v1333_v8, %v870_v22  ;;  %v1335_v5 = vmul.f32 %v3166_v17, %v3587_v41  ;;  %v3589_v16 = vld [vmem:[#allocation7_spill] sm:$0xff]  ;;  %v3592_v17 = vld [vmem:[#allocation10_spill] sm:$0xff] }
 0x147   :  { %v2480_v1 = vpop.eup %2479  ;;  %2499 = vrcp.f32 %v1160_v24  ;;  %v1163_v15 = vadd.f32 1.0, %v2478_v51  ;;  %v1396_v11 = vmul.f32 %v1332_v7, %v759_v56  ;;  %v872_v13 = vpop.f32.mrb[39].mxu1  ;;  %v1467_v35 = vpack.c.bf16 %v1395_v63, %v1391_v38  ;;  %v3590_v38 = vld [vmem:[#allocation8_spill] sm:$0xff]  ;;  %v3596_v41 = vld [vmem:[#allocation14_spill] sm:$0xff] }
 0x148   :  { %v2482_v34 = vpop.eup %2481  ;;  %2501 = vrcp.f32 %v1162_v57  ;;  %v1165_v55 = vadd.f32 1.0, %v2480_v1  ;;  %v1398_v31 = vmul.f32 %v1334_v49, %v872_v13  ;;  %v1469_v39 = vpack.c.bf16 %v1397_v30, %v1393_v14  ;;  %v3593_v57 = vld [vmem:[#allocation11_spill] sm:$0xff]  ;;  %v3594_v56 = vld [vmem:[#allocation12_spill] sm:$0xff] }
 0x149   :  { %v2484_v12 = vpop.eup %2483  ;;  %2503 = vrcp.f32 %v1163_v15  ;;  %v1164_v26 = vadd.f32 1.0, %v2482_v34  ;;  %v1468_v33 = vpack.c.bf16 %v1396_v11, %v1392_v29  ;;  %v3315_v40 = vmul.f32 -1.442695, %v3588_v18  ;;  %v763_v29 = vpop.f32.mrb[40].mxu0 }
 0x14a   :  { %v2486_v50 = vpop.eup %2485  ;;  %2505 = vrcp.f32 %v1165_v55  ;;  %v1470_v8 = vpack.c.bf16 %v1398_v31, %v1394_v36  ;;  %v1337_v24 = vmul.f32 %v3175_v6, %v3589_v16  ;;  %v1336_v49 = vmul.f32 %v3188_v44, %v3590_v38  ;;  %v876_v6 = vpop.f32.mrb[40].mxu1  ;;  %v3597_v16 = vld [vmem:[#allocation15_spill] sm:$0xff] }
 0x14b   :  { %v2488_v7 = vpop.eup %2487  ;;  %v1338_v14 = vmul.f32 %v3203_v10, %v3591_v58  ;;  %2507 = vrcp.f32 %v1164_v26  ;;  %1791 = vmatprep.mubr.bf16.mxu0 %v1468_v33  ;;  %v1339_v51 = vmul.f32 %v3218_v43, %v3592_v17  ;;  %v1341_v36 = vmul.f32 %v3230_v3, %v3593_v57  ;;  %v765_v22 = vpop.f32.mrb[41].mxu0  ;;  %v3595_v3 = vld [vmem:[#allocation13_spill] sm:$0xff] }
 0x14c   :  { %v2490_v20 = vpop.eup %2489  ;;  %2509 = vpow2.f32 %v3248_v48  ;;  %v1399_v63 = vmul.f32 %v1335_v5, %v763_v29  ;;  %1888 = vmatprep.mubr.bf16.mxu1 %v1470_v8  ;;  %1792 = vmatmul.mubr.bf16.gmra.mrb[68].mxu0 %v1467_v35  ;;  %v1340_v10 = vmul.f32 %v3240_v21, %v3594_v56  ;;  %v1401_v1 = vmul.f32 %v1337_v24, %v876_v6  ;;  %v878_v30 = vpop.f32.mrb[41].mxu1 }
 0x14d   :  { %v2492_v44 = vpop.eup %2491  ;;  %2511 = vpow2.f32 %v3257_v42  ;;  %v1400_v15 = vmul.f32 %v1336_v49, %v765_v22  ;;  %1889 = vmatmul.mubr.bf16.gmra.mrb[68].mxu1 %v1469_v39  ;;  %v767_v43 = vpop.f32.mrb[42].mxu0  ;;  %v1342_v48 = vmul.f32 %v3250_v60, %v3595_v3  ;;  %v1402_v13 = vmul.f32 %v1338_v14, %v878_v30 }
 0x14e   :  { %v2494_v11 = vpop.eup %2493  ;;  %2513 = vpow2.f32 %v3260_v27  ;;  %v1403_v34 = vmul.f32 %v1339_v51, %v767_v43  ;;  %v880_v55 = vpop.f32.mrb[42].mxu1  ;;  %v2139_v21 = vmul.f32 -1.442695, %v3146_v2  ;;  %v1343_v5 = vmul.f32 %v3262_v61, %v3596_v41 }
 0x14f   :  { %v769_v35 = vpop.f32.mrb[43].mxu0  ;;  %v2496_v31 = vpop.eup %2495  ;;  %2515 = vpow2.f32 %v3265_v37  ;;  %v1405_v42 = vmul.f32 %v1341_v36, %v880_v55  ;;  %v1345_v24 = vmul.f32 %v3273_v0, %v3597_v16  ;;  %v1344_v58 = vmul.f32 %v2484_v12, %v3058_v46  ;;  %v3599_v36 = vld [vmem:[#allocation16_spill] sm:$0xff]  ;;  %v3600_v55 = vld [vmem:[#allocation17_spill] sm:$0xff] }
 0x150   :  { %v1404_v26 = vmul.f32 %v1340_v10, %v769_v35  ;;  %v882_v33 = vpop.f32.mrb[43].mxu1  ;;  %v2498_v39 = vpop.eup %2497  ;;  %2517 = vpow2.f32 %v3268_v45  ;;  %v1471_v60 = vpack.c.bf16 %v1403_v34, %v1399_v63  ;;  %v1346_v14 = vmul.f32 %v2486_v50, %v3063_v54 }
 0x151   :  { %v1406_v27 = vmul.f32 %v1342_v48, %v882_v33  ;;  %v2500_v8 = vpop.eup %2499  ;;  %2519 = vpow2.f32 %v3271_v47  ;;  %v1473_v37 = vpack.c.bf16 %v1405_v42, %v1401_v1  ;;  %v1347_v45 = vmul.f32 %v2488_v7, %v3068_v59  ;;  %v773_v47 = vpop.f32.mrb[44].mxu0 }
 0x152   :  { %v1472_v38 = vpack.c.bf16 %v1404_v26, %v1400_v15  ;;  %v2502_v49 = vpop.eup %2501  ;;  %2521 = vpow2.f32 %v3280_v52  ;;  %v1349_v17 = vmul.f32 %v2490_v20, %v3070_v62  ;;  %v1348_v51 = vmul.f32 %v2492_v44, %v3075_v4  ;;  %v886_v52 = vpop.f32.mrb[44].mxu1  ;;  %v3598_v4 = vld [vmem:[#allocation45_spill] sm:$0xff]  ;;  %v3601_v26 = vld [vmem:[#allocation18_spill] sm:$0xff] }
 0x153   :  { %v1474_v61 = vpack.c.bf16 %v1406_v27, %v1402_v13  ;;  %v2504_v29 = vpop.eup %2503  ;;  %2523 = vpow2.f32 %v3283_v53  ;;  %v1350_v57 = vmul.f32 %v2494_v11, %v3077_v9  ;;  %v1351_v46 = vmul.f32 %v2496_v31, %v3091_v19  ;;  %v775_v12 = vpop.f32.mrb[45].mxu0  ;;  %v3603_v27 = vld [vmem:[#allocation20_spill] sm:$0xff] }
 0x154   :  { %1799 = vmatprep.mubr.bf16.mxu0 %v1472_v38  ;;  %v2506_v0 = vpop.eup %2505  ;;  %2525 = vpow2.f32 %v3286_v28  ;;  %v1407_v54 = vmul.f32 %v1343_v5, %v773_v47  ;;  %v1353_v62 = vmul.f32 %v2498_v39, %v3096_v23  ;;  %v1409_v53 = vmul.f32 %v1345_v24, %v886_v52  ;;  %v888_v7 = vpop.f32.mrb[45].mxu1  ;;  %v3602_v39 = vld [vmem:[#allocation19_spill] sm:$0xff] }
 0x155   :  { %1896 = vmatprep.mubr.bf16.mxu1 %v1474_v61  ;;  %1800 = vmatmul.mubr.bf16.gmra.mrb[72].mxu0 %v1471_v60  ;;  %v2508_v59 = vpop.eup %2507  ;;  %2527 = vpow2.f32 %v3598_v4  ;;  %v1408_v50 = vmul.f32 %v1344_v58, %v775_v12  ;;  %v777_v20 = vpop.f32.mrb[46].mxu0  ;;  %v1352_v19 = vmul.f32 %v2500_v8, %v3599_v36  ;;  %v1410_v28 = vmul.f32 %v1346_v14, %v888_v7 }
 0x156   :  { %1897 = vmatmul.mubr.bf16.gmra.mrb[72].mxu1 %v1473_v37  ;;  %v2510_v9 = vpop.eup %2509  ;;  %2529 = vpow2.f32 %v3299_v25  ;;  %v1411_v63 = vmul.f32 %v1347_v45, %v777_v20  ;;  %v890_v6 = vpop.f32.mrb[46].mxu1  ;;  %v1354_v35 = vmul.f32 %v2502_v49, %v3600_v55  ;;  %v1355_v33 = vmul.f32 %v2504_v29, %v3601_v26  ;;  %v3609_v55 = vld [vmem:[#allocation22_spill] sm:$0xff] }
 0x157   :  { %v779_v22 = vpop.f32.mrb[47].mxu0  ;;  %v2512_v44 = vpop.eup %2511  ;;  %v1166_v56 = vadd.f32 1.0, %v2510_v9  ;;  %2531 = vpow2.f32 %v3315_v40  ;;  %v1413_v23 = vmul.f32 %v1349_v17, %v890_v6  ;;  %v1357_v41 = vmul.f32 %v2506_v0, %v3602_v39 }
 0x158   :  { %v1412_v10 = vmul.f32 %v1348_v51, %v779_v22  ;;  %v892_v1 = vpop.f32.mrb[47].mxu1  ;;  %v2514_v15 = vpop.eup %2513  ;;  %v1167_v30 = vadd.f32 1.0, %v2512_v44  ;;  %2533 = vpow2.f32 %v2139_v21  ;;  %v1475_v43 = vpack.c.bf16 %v1411_v63, %v1407_v54  ;;  %v3604_v63 = vld [vmem:[#allocation33_spill] sm:$0xff] }
 0x159   :  { %v1414_v11 = vmul.f32 %v1350_v57, %v892_v1  ;;  %v2516_v3 = vpop.eup %2515  ;;  %2535 = vrcp.f32 %v1166_v56  ;;  %v1169_v48 = vadd.f32 1.0, %v2514_v15  ;;  %v1477_v25 = vpack.c.bf16 %v1413_v23, %v1409_v53  ;;  %v783_v5 = vpop.f32.mrb[48].mxu0  ;;  %v3605_v56 = vld [vmem:[#allocation34_spill] sm:$0xff]  ;;  %v3606_v15 = vld [vmem:[#allocation21_spill] sm:$0xff] }
 0x15a   :  { %v1476_v13 = vpack.c.bf16 %v1412_v10, %v1408_v50  ;;  %v2518_v34 = vpop.eup %2517  ;;  %2537 = vrcp.f32 %v1167_v30  ;;  %v1168_v31 = vadd.f32 1.0, %v2516_v3  ;;  %v1356_v8 = vmul.f32 %v2508_v59, %v3603_v27  ;;  %v896_v37 = vpop.f32.mrb[48].mxu1  ;;  %v3608_v3 = vld [vmem:[#allocation36_spill] sm:$0xff] }
 0x15b   :  { %v1478_v42 = vpack.c.bf16 %v1414_v11, %v1410_v28  ;;  %v2520_v40 = vpop.eup %2519  ;;  %2539 = vrcp.f32 %v1169_v48  ;;  %v1170_v21 = vadd.f32 1.0, %v2518_v34  ;;  %v1415_v24 = vmul.f32 %v1351_v46, %v783_v5  ;;  %v785_v38 = vpop.f32.mrb[49].mxu0 }
 0x15c   :  { %1807 = vmatprep.mubr.bf16.mxu0 %v1476_v13  ;;  %v2522_v60 = vpop.eup %2521  ;;  %2541 = vrcp.f32 %v1168_v31  ;;  %v1171_v16 = vadd.f32 1.0, %v2520_v40  ;;  %v3361_v14 = vmul.f32 %v1353_v62, %v896_v37  ;;  %v1416_v61 = vmul.f32 %v1352_v19, %v785_v38  ;;  %v898_v29 = vpop.f32.mrb[49].mxu1  ;;  %v3610_v31 = vld [vmem:[#allocation37_spill] sm:$0xff]  ;;  %v3611_v40 = vld [vmem:[#allocation38_spill] sm:$0xff]  ;;  %v3614_v38 = vld [vmem:[#allocation24_spill] sm:$0xff] }
 0x15d   :  { %1904 = vmatprep.mubr.bf16.mxu1 %v1478_v42  ;;  %1808 = vmatmul.mubr.bf16.gmra.mrb[76].mxu0 %v1475_v43  ;;  %v2524_v49 = vpop.eup %2523  ;;  %2543 = vrcp.f32 %v1170_v21  ;;  %v1173_v58 = vadd.f32 1.0, %v2522_v60  ;;  %v787_v45 = vpop.f32.mrb[50].mxu0  ;;  %v3363_v47 = vmul.f32 %v1354_v35, %v898_v29  ;;  %v2140_v6 = vmul.f32 -1.442695, %v3604_v63  ;;  %v3607_v43 = vld [vmem:[#allocation35_spill] sm:$0xff] }
 0x15e   :  { %1905 = vmatmul.mubr.bf16.gmra.mrb[76].mxu1 %v1477_v25  ;;  %v2526_v17 = vpop.eup %2525  ;;  %2545 = vrcp.f32 %v1171_v16  ;;  %v1172_v51 = vadd.f32 1.0, %v2524_v49  ;;  %v1419_v0 = vmul.f32 %v1355_v33, %v787_v45  ;;  %v900_v57 = vpop.f32.mrb[50].mxu1  ;;  %v2142_v23 = vmul.f32 -1.442695, %v3605_v56  ;;  %v3612_v21 = vld [vmem:[#allocation23_spill] sm:$0xff] }
 0x15f   :  { %v789_v46 = vpop.f32.mrb[51].mxu0  ;;  %v2528_v54 = vpop.eup %2527  ;;  %2547 = vrcp.f32 %v1173_v58  ;;  %v1174_v52 = vadd.f32 1.0, %v2526_v17  ;;  %v3365_v12 = vmul.f32 %v1357_v41, %v900_v57  ;;  %v2141_v11 = vmul.f32 -1.442695, %v3607_v43  ;;  %v3613_v60 = vld [vmem:[#allocation39_spill] sm:$0xff]  ;;  %v3615_v58 = vld [vmem:[#allocation40_spill] sm:$0xff] }
 0x160   :  { %v1420_v59 = vmul.f32 %v1356_v8, %v789_v46  ;;  %v902_v62 = vpop.f32.mrb[51].mxu1  ;;  %v2530_v4 = vpop.eup %2529  ;;  %2549 = vrcp.f32 %v1172_v51  ;;  %v1175_v53 = vadd.f32 1.0, %v2528_v54  ;;  %v1479_v50 = vpack.c.bf16 %v1419_v0, %v1415_v24  ;;  %v3616_v17 = vld [vmem:[#allocation25_spill] sm:$0xff]  ;;  %v3617_v54 = vld [vmem:[#allocation26_spill] sm:$0xff] }
 0x161   :  { %v2532_v7 = vpop.eup %2531  ;;  %2551 = vrcp.f32 %v1174_v52  ;;  %v1177_v20 = vadd.f32 1.0, %v2530_v4  ;;  %v1481_v9 = vpack.c.bf16 %v3365_v12, %v3361_v14  ;;  %v793_v10 = vpop.f32.mrb[52].mxu0  ;;  %v2143_v48 = vmul.f32 -1.442695, %v3608_v3  ;;  %v3618_v12 = vld [vmem:[#allocation41_spill] sm:$0xff] }
 0x162   :  { %v1480_v36 = vpack.c.bf16 %v1420_v59, %v1416_v61  ;;  %v2534_v19 = vpop.eup %2533  ;;  %2553 = vrcp.f32 %v1175_v53  ;;  %v1176_v28 = vadd.f32 1.0, %v2532_v7  ;;  %v906_v25 = vpop.f32.mrb[52].mxu1  ;;  %v2144_v42 = vmul.f32 -1.442695, %v3610_v31  ;;  %v3619_v53 = vld [vmem:[#allocation27_spill] sm:$0xff]  ;;  %v3620_v7 = vld [vmem:[#allocation42_spill] sm:$0xff] }
 0x163   :  { %v2536_v22 = vpop.eup %2535  ;;  %2555 = vrcp.f32 %v1177_v20  ;;  %v1178_v44 = vadd.f32 1.0, %v2534_v19  ;;  %v795_v13 = vpop.f32.mrb[53].mxu0  ;;  %v2146_v26 = vmul.f32 -1.442695, %v3611_v40  ;;  %v2145_v27 = vmul.f32 -1.442695, %v3613_v60 }
 0x164   :  { %1815 = vmatprep.mubr.bf16.mxu0 %v1480_v36  ;;  %v2538_v1 = vpop.eup %2537  ;;  %v1358_v30 = vmul.f32 %v2536_v22, %v3606_v15  ;;  %2557 = vrcp.f32 %v1176_v28  ;;  %v908_v33 = vpop.f32.mrb[53].mxu1  ;;  %v2147_v14 = vmul.f32 -1.442695, %v3615_v58  ;;  %v2148_v59 = vmul.f32 -1.442695, %v3618_v12  ;;  %v3621_v28 = vld [vmem:[#allocation28_spill] sm:$0xff] }
 0x165   :  { %1816 = vmatmul.mubr.bf16.gmra.mrb[80].mxu0 %v1479_v50  ;;  %v2540_v34 = vpop.eup %2539  ;;  %v1359_v35 = vmul.f32 %v2538_v1, %v3609_v55  ;;  %2559 = vrcp.f32 %v1178_v44  ;;  %v797_v39 = vpop.f32.mrb[54].mxu0  ;;  %v2150_v20 = vmul.f32 -1.442695, %v3620_v7  ;;  %v3623_v1 = vld [vmem:[#allocation29_spill] sm:$0xff]  ;;  %v3625_v55 = vld [vmem:[#allocation30_spill] sm:$0xff] }
 0x166   :  { %v2542_v41 = vpop.eup %2541  ;;  %v1361_v5 = vmul.f32 %v2540_v34, %v3612_v21  ;;  %2561 = vpow2.f32 %v2140_v6  ;;  %v1422_v8 = vmul.f32 %v1358_v30, %v902_v62  ;;  %v910_v16 = vpop.f32.mrb[54].mxu1  ;;  %v3622_v6 = vld [vmem:[#allocation43_spill] sm:$0xff]  ;;  %v3624_v30 = vld [vmem:[#allocation44_spill] sm:$0xff] }
 0x167   :  { %v799_v24 = vpop.f32.mrb[55].mxu0  ;;  %v2544_v37 = vpop.eup %2543  ;;  %v1360_v49 = vmul.f32 %v2542_v41, %v3614_v38  ;;  %2563 = vpow2.f32 %v2142_v23  ;;  %v3381_v61 = vmul.f32 %v1359_v35, %v793_v10  ;;  %v2149_v22 = vmul.f32 -1.442695, %v3622_v6 }
 0x168   :  { %v912_v29 = vpop.f32.mrb[55].mxu1  ;;  %v2546_v45 = vpop.eup %2545  ;;  %v1362_v51 = vmul.f32 %v2544_v37, %v3616_v17  ;;  %2565 = vpow2.f32 %v2141_v11  ;;  %v1482_v0 = vpack.c.bf16 %v1422_v8, %v3363_v47  ;;  %v3385_v57 = vmul.f32 %v1361_v5, %v906_v25 }
 0x169   :  { %v2548_v46 = vpop.eup %2547  ;;  %v1363_v52 = vmul.f32 %v2546_v45, %v3617_v54  ;;  %2567 = vpow2.f32 %v2143_v48  ;;  %v1424_v62 = vmul.f32 %v1360_v49, %v795_v13  ;;  %v803_v23 = vpop.f32.mrb[56].mxu0  ;;  %v2151_v11 = vmul.f32 -1.442695, %v3624_v30 }
 0x16a   :  { %v2550_v4 = vpop.eup %2549  ;;  %v1365_v50 = vmul.f32 %v2548_v46, %v3619_v53  ;;  %2569 = vpow2.f32 %v2144_v42  ;;  %1912 = vmatprep.mubr.bf16.mxu1 %v1482_v0  ;;  %v1426_v36 = vmul.f32 %v1362_v51, %v908_v33  ;;  %v916_v25 = vpop.f32.mrb[56].mxu1 }
 0x16b   :  { %v2552_v19 = vpop.eup %2551  ;;  %v1364_v47 = vmul.f32 %v2550_v4, %v3621_v28  ;;  %2571 = vpow2.f32 %v2146_v26  ;;  %1913 = vmatmul.mubr.bf16.gmra.mrb[80].mxu1 %v1481_v9  ;;  %v1427_v44 = vmul.f32 %v1363_v52, %v797_v39  ;;  %v805_v13 = vpop.f32.mrb[57].mxu0 }
 0x16c   :  { %v2554_v10 = vpop.eup %2553  ;;  %v1366_v15 = vmul.f32 %v2552_v19, %v3623_v1  ;;  %2573 = vpow2.f32 %v2145_v27  ;;  %v1429_v48 = vmul.f32 %v1365_v50, %v910_v16  ;;  %v918_v33 = vpop.f32.mrb[57].mxu1 }
 0x16d   :  { %v2556_v34 = vpop.eup %2555  ;;  %v1367_v35 = vmul.f32 %v2554_v10, %v3625_v55  ;;  %2575 = vpow2.f32 %v2147_v14  ;;  %v1483_v42 = vpack.c.bf16 %v1427_v44, %v3381_v61  ;;  %v1428_v26 = vmul.f32 %v1364_v47, %v799_v24  ;;  %v3397_v9 = vpop.f32.mrb[58].mxu0 }
 0x16e   :  { %v2558_v39 = vpop.eup %2557  ;;  %v1369_v41 = vmul.f32 %v2556_v34, %v3583_v32  ;;  %2577 = vpow2.f32 %v2148_v59  ;;  %v1485_v21 = vpack.c.bf16 %v1429_v48, %v3385_v57  ;;  %v1430_v5 = vmul.f32 %v1366_v15, %v912_v29  ;;  %v3401_v27 = vpop.f32.mrb[58].mxu1 }
 0x16f   :  { %v3403_v8 = vpop.f32.mrb[59].mxu0  ;;  %v2560_v16 = vpop.eup %2559  ;;  %v1368_v37 = vmul.f32 %v2558_v39, %v3588_v18  ;;  %2579 = vpow2.f32 %v2150_v20  ;;  %v1484_v38 = vpack.c.bf16 %v1428_v26, %v1424_v62  ;;  %v3406_v24 = vmul.f32 %v1367_v35, %v803_v23 }
 0x170   :  { %v3408_v49 = vpop.f32.mrb[59].mxu1  ;;  %v2562_v14 = vpop.eup %2561  ;;  %v1370_v32 = vmul.f32 %v2560_v16, %v3146_v2  ;;  %2581 = vpow2.f32 %v2149_v22  ;;  %v1486_v61 = vpack.c.bf16 %v1430_v5, %v1426_v36  ;;  %v3411_v45 = vmul.f32 %v1369_v41, %v916_v25 }
 0x171   :  { %v2564_v29 = vpop.eup %2563  ;;  %v1179_v17 = vadd.f32 1.0, %v2562_v14  ;;  %2583 = vpow2.f32 %v2151_v11  ;;  %1823 = vmatprep.mubr.bf16.mxu0 %v1484_v38  ;;  %v3413_v51 = vmul.f32 %v1368_v37, %v805_v13  ;;  %v813_v2 = vpop.f32.mrb[60].mxu0 }
 0x172   :  { %v2566_v18 = vpop.eup %2565  ;;  %v1181_v0 = vadd.f32 1.0, %v2564_v29  ;;  %1920 = vmatprep.mubr.bf16.mxu1 %v1486_v61  ;;  %v3415_v57 = vmul.f32 %v1370_v32, %v918_v33  ;;  %1824 = vmatmul.mubr.bf16.gmra.mrb[84].mxu0 %v1483_v42  ;;  %v926_v62 = vpop.f32.mrb[60].mxu1 }
 0x173   :  { %v2568_v46 = vpop.eup %2567  ;;  %2585 = vrcp.f32 %v1179_v17  ;;  %v1180_v54 = vadd.f32 1.0, %v2566_v18  ;;  %1921 = vmatmul.mubr.bf16.gmra.mrb[84].mxu1 %v1485_v21  ;;  %v815_v4 = vpop.f32.mrb[61].mxu0 }
 0x174   :  { %v2570_v52 = vpop.eup %2569  ;;  %2587 = vrcp.f32 %v1181_v0  ;;  %v1182_v59 = vadd.f32 1.0, %v2568_v46  ;;  %v928_v20 = vpop.f32.mrb[61].mxu1 }
 0x175   :  { %v2572_v53 = vpop.eup %2571  ;;  %2589 = vrcp.f32 %v1180_v54  ;;  %v1183_v50 = vadd.f32 1.0, %v2570_v52  ;;  %v3417_v36 = vpop.f32.mrb[62].mxu0 }
 0x176   :  { %v2574_v19 = vpop.eup %2573  ;;  %2591 = vrcp.f32 %v1182_v59  ;;  %v1185_v28 = vadd.f32 1.0, %v2572_v53  ;;  %v3419_v47 = vpop.f32.mrb[62].mxu1 }
 0x177   :  { %v3421_v22 = vpop.f32.mrb[63].mxu0  ;;  %v2576_v44 = vpop.eup %2575  ;;  %2593 = vrcp.f32 %v1183_v50  ;;  %v1184_v23 = vadd.f32 1.0, %v2574_v19 }
 0x178   :  { %v932_v10 = vpop.f32.mrb[63].mxu1  ;;  %v2578_v1 = vpop.eup %2577  ;;  %2595 = vrcp.f32 %v1185_v28  ;;  %v1186_v15 = vadd.f32 1.0, %v2576_v44 }
 0x179   :  { %v2580_v11 = vpop.eup %2579  ;;  %2597 = vrcp.f32 %v1184_v23  ;;  %v1187_v48 = vadd.f32 1.0, %v2578_v1 }
 0x17a   :  { %v2582_v25 = vpop.eup %2581  ;;  %2599 = vrcp.f32 %v1186_v15  ;;  %v1189_v13 = vadd.f32 1.0, %v2580_v11 }
 0x17b   :  { %v2584_v34 = vpop.eup %2583  ;;  %2601 = vrcp.f32 %v1187_v48  ;;  %v1188_v55 = vadd.f32 1.0, %v2582_v25 }
 0x17c   :  { %2603 = vrcp.f32 %v1189_v13  ;;  %v1190_v35 = vadd.f32 1.0, %v2584_v34 }
 0x17d   :  { %v2586_v42 = vpop.eup %2585  ;;  %2605 = vrcp.f32 %v1188_v55 }
 0x17e   :  { %v2588_v26 = vpop.eup %2587  ;;  %v1371_v33 = vmul.f32 %v2586_v42, %v3604_v63  ;;  %2607 = vrcp.f32 %v1190_v35 }
 0x17f   :  { %v2590_v39 = vpop.eup %2589  ;;  %v1373_v41 = vmul.f32 %v2588_v26, %v3605_v56 }
 0x180   :  { %v2592_v21 = vpop.eup %2591  ;;  %v1372_v5 = vmul.f32 %v2590_v39, %v3607_v43  ;;  %v1435_v16 = vmul.f32 %v1371_v33, %v3397_v9 }
 0x181   :  { %v2594_v37 = vpop.eup %2593  ;;  %v1374_v38 = vmul.f32 %v2592_v21, %v3608_v3  ;;  %v1437_v14 = vmul.f32 %v1373_v41, %v3401_v27 }
 0x182   :  { %v2596_v32 = vpop.eup %2595  ;;  %v1375_v61 = vmul.f32 %v2594_v37, %v3610_v31  ;;  %v1487_v29 = vpack.c.bf16 %v1435_v16, %v3406_v24  ;;  %v1436_v63 = vmul.f32 %v1372_v5, %v3403_v8 }
 0x183   :  { %v2598_v17 = vpop.eup %2597  ;;  %v1377_v56 = vmul.f32 %v2596_v32, %v3611_v40  ;;  %v1489_v18 = vpack.c.bf16 %v1437_v14, %v3411_v45  ;;  %v1438_v43 = vmul.f32 %v1374_v38, %v3408_v49 }
 0x184   :  { %v2600_v9 = vpop.eup %2599  ;;  %v1376_v0 = vmul.f32 %v2598_v17, %v3613_v60  ;;  %v1488_v3 = vpack.c.bf16 %v1436_v63, %v3413_v51  ;;  %v1439_v27 = vmul.f32 %v1375_v61, %v813_v2 }
 0x185   :  { %v2602_v46 = vpop.eup %2601  ;;  %v1378_v31 = vmul.f32 %v2600_v9, %v3615_v58  ;;  %v1490_v24 = vpack.c.bf16 %v1438_v43, %v3415_v57  ;;  %v1441_v54 = vmul.f32 %v1377_v56, %v926_v62 }
 0x186   :  { %v2604_v8 = vpop.eup %2603  ;;  %v1379_v52 = vmul.f32 %v2602_v46, %v3618_v12  ;;  %1831 = vmatprep.mubr.bf16.mxu0 %v1488_v3  ;;  %v1440_v40 = vmul.f32 %v1376_v0, %v815_v4 }
 0x187   :  { %v2606_v45 = vpop.eup %2605  ;;  %v1381_v49 = vmul.f32 %v2604_v8, %v3620_v7  ;;  %1928 = vmatprep.mubr.bf16.mxu1 %v1490_v24  ;;  %v1442_v59 = vmul.f32 %v1378_v31, %v928_v20  ;;  %1832 = vmatmul.mubr.bf16.gmra.mrb[88].mxu0 %v1487_v29 }
 0x188   :  { %v2608_v60 = vpop.eup %2607  ;;  %v1380_v51 = vmul.f32 %v2606_v45, %v3622_v6  ;;  %1929 = vmatmul.mubr.bf16.gmra.mrb[88].mxu1 %v1489_v18  ;;  %v1443_v58 = vmul.f32 %v1379_v52, %v3417_v36 }
 0x189   :  { %v1382_v57 = vmul.f32 %v2608_v60, %v3624_v30  ;;  %v1445_v2 = vmul.f32 %v1381_v49, %v3419_v47 }
 0x18a   :  { %v1491_v62 = vpack.c.bf16 %v1443_v58, %v1439_v27  ;;  %v1444_v12 = vmul.f32 %v1380_v51, %v3421_v22 }
 0x18b   :  { %v1493_v4 = vpack.c.bf16 %v1445_v2, %v1441_v54  ;;  %v1446_v53 = vmul.f32 %v1382_v57, %v932_v10 }
 0x18c   :  { %v1492_v50 = vpack.c.bf16 %v1444_v12, %v1440_v40 }
 0x18d   :  { %v1494_v7 = vpack.c.bf16 %v1446_v53, %v1442_v59 }
 0x18e   :  { %1839 = vmatprep.mubr.bf16.mxu0 %v1492_v50 }
 0x18f   :  { %1936 = vmatprep.mubr.bf16.mxu1 %v1494_v7  ;;  %1840 = vmatmul.mubr.bf16.gmra.mrb[92].mxu0 %v1491_v62 }
 0x190   :  { %1937 = vmatmul.mubr.bf16.gmra.mrb[92].mxu1 %v1493_v4 }
 0x217   :  { %v2200_v20 = vpop.f32.mrb[64].mxu0 }
 0x218   :  { %v2264_v6 = vpop.f32.mrb[64].mxu1  ;;  %v2201_v19 = vpop.f32.mrb[65].mxu0 }
 0x219   :  { %v2202_v28 = vadd.f32 %v2201_v19, %v2200_v20  ;;  %v2265_v36 = vpop.f32.mrb[65].mxu1  ;;  %v2203_v44 = vpop.f32.mrb[66].mxu0 }
 0x21a   :  { %v2266_v30 = vadd.f32 %v2265_v36, %v2264_v6  ;;  %v2267_v23 = vpop.f32.mrb[66].mxu1  ;;  %v2204_v47 = vpop.f32.mrb[67].mxu0 }
 0x21b   :  { %v2205_v1 = vadd.f32 %v2204_v47, %v2203_v44  ;;  %v2268_v15 = vpop.f32.mrb[67].mxu1 }
 0x21c   :  { %v1883_v22 = vadd.f32 %v2266_v30, %v2202_v28  ;;  %v2269_v11 = vadd.f32 %v2268_v15, %v2267_v23 }
 0x21e   :  { %1996 = vst [vmem:[%s3497_s3] sm:$0xff] %v1883_v22  ;;  %v1886_v10 = vadd.f32 %v2269_v11, %v2205_v1 }
 0x21f   :  { %v2206_v48 = vpop.f32.mrb[68].mxu0 }
 0x220   :  { %1997 = vst [vmem:[%s3497_s3 + $0x8] sm:$0xff] %v1886_v10  ;;  %v2270_v25 = vpop.f32.mrb[68].mxu1  ;;  %v2207_v13 = vpop.f32.mrb[69].mxu0 }
 0x221   :  { %v2208_v34 = vadd.f32 %v2207_v13, %v2206_v48  ;;  %v2271_v55 = vpop.f32.mrb[69].mxu1  ;;  %v2209_v35 = vpop.f32.mrb[70].mxu0 }
 0x222   :  { %v2272_v42 = vadd.f32 %v2271_v55, %v2270_v25  ;;  %v2273_v26 = vpop.f32.mrb[70].mxu1  ;;  %v2210_v33 = vpop.f32.mrb[71].mxu0 }
 0x223   :  { %v2211_v39 = vadd.f32 %v2210_v33, %v2209_v35  ;;  %v2274_v41 = vpop.f32.mrb[71].mxu1 }
 0x224   :  { %v1891_v21 = vadd.f32 %v2272_v42, %v2208_v34  ;;  %v2275_v5 = vadd.f32 %v2274_v41, %v2273_v26 }
 0x226   :  { %1998 = vst [vmem:[%s3497_s3 + $0x10] sm:$0xff] %v1891_v21  ;;  %v1894_v16 = vadd.f32 %v2275_v5, %v2211_v39 }
 0x228   :  { %v2212_v37 = vpop.f32.mrb[72].mxu0  ;;  %1999 = vst [vmem:[%s3497_s3 + $0x18] sm:$0xff] %v1894_v16 }
 0x229   :  { %v2276_v38 = vpop.f32.mrb[72].mxu1  ;;  %v2213_v14 = vpop.f32.mrb[73].mxu0 }
 0x22a   :  { %v2214_v32 = vadd.f32 %v2213_v14, %v2212_v37  ;;  %v2277_v61 = vpop.f32.mrb[73].mxu1  ;;  %v2215_v29 = vpop.f32.mrb[74].mxu0 }
 0x22b   :  { %v2278_v63 = vadd.f32 %v2277_v61, %v2276_v38  ;;  %v2279_v17 = vpop.f32.mrb[74].mxu1  ;;  %v2216_v56 = vpop.f32.mrb[75].mxu0 }
 0x22c   :  { %v2217_v18 = vadd.f32 %v2216_v56, %v2215_v29  ;;  %v2280_v43 = vpop.f32.mrb[75].mxu1 }
 0x22d   :  { %v1899_v9 = vadd.f32 %v2278_v63, %v2214_v32  ;;  %v2281_v0 = vadd.f32 %v2280_v43, %v2279_v17 }
 0x22f   :  { %2000 = vst [vmem:[%s3497_s3 + $0x20] sm:$0xff] %v1899_v9  ;;  %v1902_v3 = vadd.f32 %v2281_v0, %v2217_v18 }
 0x230   :  { %v2218_v27 = vpop.f32.mrb[76].mxu0 }
 0x231   :  { %2001 = vst [vmem:[%s3497_s3 + $0x28] sm:$0xff] %v1902_v3  ;;  %v2282_v46 = vpop.f32.mrb[76].mxu1  ;;  %v2219_v31 = vpop.f32.mrb[77].mxu0 }
 0x232   :  { %v2220_v24 = vadd.f32 %v2219_v31, %v2218_v27  ;;  %v2283_v54 = vpop.f32.mrb[77].mxu1  ;;  %v2221_v8 = vpop.f32.mrb[78].mxu0 }
 0x233   :  { %v2284_v52 = vadd.f32 %v2283_v54, %v2282_v46  ;;  %v2285_v40 = vpop.f32.mrb[78].mxu1  ;;  %v2222_v45 = vpop.f32.mrb[79].mxu0 }
 0x234   :  { %v2223_v49 = vadd.f32 %v2222_v45, %v2221_v8  ;;  %v2286_v59 = vpop.f32.mrb[79].mxu1 }
 0x235   :  { %v1907_v60 = vadd.f32 %v2284_v52, %v2220_v24  ;;  %v2287_v51 = vadd.f32 %v2286_v59, %v2285_v40 }
 0x237   :  { %2002 = vst [vmem:[%s3497_s3 + $0x30] sm:$0xff] %v1907_v60  ;;  %v1910_v58 = vadd.f32 %v2287_v51, %v2223_v49 }
 0x238   :  { %v2224_v57 = vpop.f32.mrb[80].mxu0 }
 0x239   :  { %2003 = vst [vmem:[%s3497_s3 + $0x38] sm:$0xff] %v1910_v58  ;;  %v2225_v2 = vpop.f32.mrb[81].mxu0 }
 0x23a   :  { %v2226_v62 = vadd.f32 %v2225_v2, %v2224_v57  ;;  %v2227_v12 = vpop.f32.mrb[82].mxu0 }
 0x23b   :  { %v2228_v4 = vpop.f32.mrb[83].mxu0 }
 0x23c   :  { %v2229_v53 = vadd.f32 %v2228_v4, %v2227_v12 }
 0x23e   :  { %v2288_v50 = vpop.f32.mrb[80].mxu1 }
 0x23f   :  { %v2289_v7 = vpop.f32.mrb[81].mxu1 }
 0x240   :  { %v2290_v20 = vadd.f32 %v2289_v7, %v2288_v50  ;;  %v2291_v6 = vpop.f32.mrb[82].mxu1 }
 0x241   :  { %v2292_v19 = vpop.f32.mrb[83].mxu1 }
 0x242   :  { %v1915_v28 = vadd.f32 %v2290_v20, %v2226_v62  ;;  %v2293_v36 = vadd.f32 %v2292_v19, %v2291_v6 }
 0x244   :  { %2004 = vst [vmem:[%s3497_s3 + $0x40] sm:$0xff] %v1915_v28  ;;  %v1918_v44 = vadd.f32 %v2293_v36, %v2229_v53 }
 0x245   :  { %v2230_v30 = vpop.f32.mrb[84].mxu0 }
 0x246   :  { %2005 = vst [vmem:[%s3497_s3 + $0x48] sm:$0xff] %v1918_v44  ;;  %v2294_v23 = vpop.f32.mrb[84].mxu1  ;;  %v2231_v47 = vpop.f32.mrb[85].mxu0 }
 0x247   :  { %v2232_v1 = vadd.f32 %v2231_v47, %v2230_v30  ;;  %v2295_v15 = vpop.f32.mrb[85].mxu1  ;;  %v2233_v22 = vpop.f32.mrb[86].mxu0 }
 0x248   :  { %v2296_v11 = vadd.f32 %v2295_v15, %v2294_v23  ;;  %v2297_v10 = vpop.f32.mrb[86].mxu1  ;;  %v2234_v48 = vpop.f32.mrb[87].mxu0 }
 0x249   :  { %v2235_v25 = vadd.f32 %v2234_v48, %v2233_v22  ;;  %v2298_v13 = vpop.f32.mrb[87].mxu1 }
 0x24a   :  { %v1923_v34 = vadd.f32 %v2296_v11, %v2232_v1  ;;  %v2299_v55 = vadd.f32 %v2298_v13, %v2297_v10 }
 0x24c   :  { %2006 = vst [vmem:[%s3497_s3 + $0x50] sm:$0xff] %v1923_v34  ;;  %v1926_v35 = vadd.f32 %v2299_v55, %v2235_v25 }
 0x24e   :  { %2007 = vst [vmem:[%s3497_s3 + $0x58] sm:$0xff] %v1926_v35 }
 0x25a   :  { %v2236_v42 = vpop.f32.mrb[88].mxu0 }
 0x25b   :  { %v2300_v26 = vpop.f32.mrb[88].mxu1  ;;  %v2237_v33 = vpop.f32.mrb[89].mxu0 }
 0x25c   :  { %v2238_v39 = vadd.f32 %v2237_v33, %v2236_v42  ;;  %v2301_v41 = vpop.f32.mrb[89].mxu1  ;;  %v2239_v21 = vpop.f32.mrb[90].mxu0 }
 0x25d   :  { %v2302_v5 = vadd.f32 %v2301_v41, %v2300_v26  ;;  %v2303_v16 = vpop.f32.mrb[90].mxu1  ;;  %v2240_v37 = vpop.f32.mrb[91].mxu0 }
 0x25e   :  { %v2241_v38 = vadd.f32 %v2240_v37, %v2239_v21  ;;  %v2304_v14 = vpop.f32.mrb[91].mxu1 }
 0x25f   :  { %v1931_v32 = vadd.f32 %v2302_v5, %v2238_v39  ;;  %v2305_v61 = vadd.f32 %v2304_v14, %v2303_v16 }
 0x261   :  { %2008 = vst [vmem:[%s3497_s3 + $0x60] sm:$0xff] %v1931_v32  ;;  %v1934_v29 = vadd.f32 %v2305_v61, %v2241_v38 }
 0x262   :  { %v2242_v63 = vpop.f32.mrb[92].mxu0 }
 0x263   :  { %2009 = vst [vmem:[%s3497_s3 + $0x68] sm:$0xff] %v1934_v29  ;;  %v2306_v17 = vpop.f32.mrb[92].mxu1  ;;  %v2243_v56 = vpop.f32.mrb[93].mxu0 }
 0x264   :  { %v2244_v18 = vadd.f32 %v2243_v56, %v2242_v63  ;;  %v2307_v43 = vpop.f32.mrb[93].mxu1  ;;  %v2245_v9 = vpop.f32.mrb[94].mxu0 }
 0x265   :  { %v2308_v0 = vadd.f32 %v2307_v43, %v2306_v17  ;;  %v2309_v3 = vpop.f32.mrb[94].mxu1  ;;  %v2246_v27 = vpop.f32.mrb[95].mxu0 }
 0x266   :  { %v2247_v46 = vadd.f32 %v2246_v27, %v2245_v9  ;;  %v2310_v31 = vpop.f32.mrb[95].mxu1 }
 0x267   :  { %v1939_v24 = vadd.f32 %v2308_v0, %v2244_v18  ;;  %v2311_v54 = vadd.f32 %v2310_v31, %v2309_v3 }
 0x269   :  { %2010 = vst [vmem:[%s3497_s3 + $0x70] sm:$0xff] %v1939_v24  ;;  %v1942_v8 = vadd.f32 %v2311_v54, %v2247_v46 }
 0x26b   :  { %2011 = vst [vmem:[%s3497_s3 + $0x78] sm:$0xff] %v1942_v8 }

</bundles_post_ra>
